<compile_context>
chip_gen: v7x
topology: tpu7x:2x2x1
jax: 0.10.0
libtpu: 0.0.40
codegen_flags: <defaults>
</compile_context>

<pallas_src>
import jax
import jax.numpy as jnp
from jax.experimental import pallas as pl

# ----------------------------- hyperparameters ------------------------------
D_MODEL = 32          # d_model
NHEAD = 4             # nhead
HEAD_DIM = D_MODEL // NHEAD
HIDDEN = 4 * D_MODEL  # MLP hidden width
BATCH = 2
N_TGT = 8             # decoder (query) sequence length
N_MEM = 16            # memory (encoder) sequence length

_LN_EPS = 1e-5


# ------------------------------ kernel helpers -------------------------------
def _layer_norm(v, g, b):
    mu = jnp.mean(v, axis=-1, keepdims=True)
    d = v - mu
    var = jnp.mean(d * d, axis=-1, keepdims=True)
    return d * jax.lax.rsqrt(var + _LN_EPS) * g + b


def _erf(z):
    # Abramowitz & Stegun 7.1.26 rational approximation, |error| < 1.5e-7.
    a1, a2, a3, a4, a5 = (0.254829592, -0.284496736, 1.421413741,
                          -1.453152027, 1.061405429)
    p = 0.3275911
    za = jnp.abs(z)
    t = pl.reciprocal(1.0 + p * za, approx=True)          # EUP, not VPU divide
    poly = ((((a5 * t + a4) * t + a3) * t + a2) * t + a1) * t
    y = 1.0 - poly * jnp.exp(-za * za)
    return jnp.where(z >= 0.0, y, -y)


def _gelu(x):
    # exact-erf GELU (matches torch.nn.GELU() default)
    return 0.5 * x * (1.0 + _erf(x * 0.7071067811865475))


def _mha(q_in, kv_in, n_q, n_kv, wqkv, wo, bo):
    """Multi-head attention over the whole flattened batch.

    q_in : [B*n_q, C] f32     kv_in : [B*n_kv, C] f32
    wqkv : [3, H, D, C] bf16  (1/sqrt(D) folded into wqkv[0])
    wo   : [H, D, C]  bf16    bo : [1, C] f32
    """
    nh, hd, c = wo.shape
    b = q_in.shape[0] // n_q

    qb = jnp.broadcast_to(q_in.astype(jnp.bfloat16)[None], (nh, b * n_q, c))
    kb = jnp.broadcast_to(kv_in.astype(jnp.bfloat16)[None], (nh, b * n_kv, c))

    # Head-batched projections; contraction on the last dim of both operands
    # (same canonical 'bqd,bkd->bqk'-style dot_general flash attention uses).
    q = jnp.einsum('hxc,hdc->hxd', qb, wqkv[0], preferred_element_type=jnp.float32)
    k = jnp.einsum('hxc,hdc->hxd', kb, wqkv[1], preferred_element_type=jnp.float32)
    v = jnp.einsum('hxc,hdc->hxd', kb, wqkv[2], preferred_element_type=jnp.float32)

    # [H, B*n, D] -> [H*B, n, D]: row-major split of the tile-aligned sublane
    # dim; one leading batch dim for the score/context matmuls.
    q = q.reshape(nh * b, n_q, hd).astype(jnp.bfloat16)
    k = k.reshape(nh * b, n_kv, hd).astype(jnp.bfloat16)
    v = v.reshape(nh * b, n_kv, hd).astype(jnp.bfloat16)

    s = jnp.einsum('gnd,gmd->gnm', q, k, preferred_element_type=jnp.float32)
    s = s - jnp.max(s, axis=-1, keepdims=True)
    p = jnp.exp(s)
    p = p * pl.reciprocal(jnp.sum(p, axis=-1, keepdims=True), approx=True)

    o = jnp.einsum('gnm,gmd->gnd', p.astype(jnp.bfloat16), v,
                   preferred_element_type=jnp.float32)        # [H*B, n_q, D]
    o = o.reshape(nh, b * n_q, hd).astype(jnp.bfloat16)       # [H, B*n_q, D]
    # Per-head output projection summed over heads == concat(heads) @ Wp.T
    o = jnp.einsum('hxd,hdc->hxc', o, wo, preferred_element_type=jnp.float32)
    return jnp.sum(o, axis=0) + bo


# --------------------------------- kernel ------------------------------------
def decoder_layer_kernel(x_ref, mem_ref, sa_wqkv_ref, ca_wqkv_ref, wo_ref,
                         fc1w_ref, fc2w_ref, vb_ref, fc1b_ref, o_ref):
    x = x_ref[...]            # [B*N, C] f32
    mem = mem_ref[...]        # [B*M, C] f32
    vb = vb_ref[...]          # [16, C]  f32 vector bank
    wo = wo_ref[...]          # [2, H, D, C] bf16 output-proj bank

    # x = x + self_attn(norm1(x), norm1(x), norm1(x))
    h = _layer_norm(x, vb[0:1], vb[1:2])
    x = x + _mha(h, h, N_TGT, N_TGT, sa_wqkv_ref[...], wo[0], vb[6:7])

    # x = x + cross_attn(norm2(x), mem, mem)
    h = _layer_norm(x, vb[2:3], vb[3:4])
    x = x + _mha(h, mem, N_TGT, N_MEM, ca_wqkv_ref[...], wo[1], vb[7:8])

    # x = x + mlp(norm3(x))   (Dropout layers are identity at inference)
    h = _layer_norm(x, vb[4:5], vb[5:6])
    fc = jnp.dot(h.astype(jnp.bfloat16), fc1w_ref[...],
                 preferred_element_type=jnp.float32) + fc1b_ref[...]
    fc = _gelu(fc)
    mlp = jnp.dot(fc.astype(jnp.bfloat16), fc2w_ref[...],
                  preferred_element_type=jnp.float32) + vb[8:9]

    o_ref[...] = (x + mlp).astype(o_ref.dtype)   # single full-block store


# -------------------------------- wrapper -------------------------------------
def transformer_decoder_layer(x, mem, kp):
    B, N, C = x.shape
    _, M, _ = mem.shape
    out_flat = pl.pallas_call(
        decoder_layer_kernel,
        out_shape=jax.ShapeDtypeStruct((B * N, C), jnp.float32),
    )(x.reshape(B * N, C), mem.reshape(B * M, C),
      kp['sa_wqkv'], kp['ca_wqkv'], kp['wo_bank'],
      kp['fc1_w'], kp['fc2_w'], kp['vec_bank'], kp['fc1_b'])
    return out_flat.reshape(B, N, C)


# --------------------- parameter construction & prep --------------------------
def init_torch_params(key):
    """Parameters in PyTorch layout: Linear weights are [out_features, in_features]."""
    C, F = D_MODEL, HIDDEN
    ks = jax.random.split(key, 14)
    std = C ** -0.5

    def lin(k, out_f, in_f, s):
        return s * jax.random.normal(k, (out_f, in_f), jnp.float32)

    return {
        'ln1_g': jnp.ones((C,), jnp.float32), 'ln1_b': jnp.zeros((C,), jnp.float32),
        'ln2_g': jnp.ones((C,), jnp.float32), 'ln2_b': jnp.zeros((C,), jnp.float32),
        'ln3_g': jnp.ones((C,), jnp.float32), 'ln3_b': jnp.zeros((C,), jnp.float32),
        'sa_wq': lin(ks[0], C, C, std), 'sa_wk': lin(ks[1], C, C, std),
        'sa_wv': lin(ks[2], C, C, std), 'sa_wp': lin(ks[3], C, C, std),
        'sa_bp': 0.02 * jax.random.normal(ks[4], (C,), jnp.float32),
        'ca_wq': lin(ks[5], C, C, std), 'ca_wk': lin(ks[6], C, C, std),
        'ca_wv': lin(ks[7], C, C, std), 'ca_wp': lin(ks[8], C, C, std),
        'ca_bp': 0.02 * jax.random.normal(ks[9], (C,), jnp.float32),
        'fc1_w': lin(ks[10], F, C, std),
        'fc1_b': 0.02 * jax.random.normal(ks[11], (F,), jnp.float32),
        'fc2_w': lin(ks[12], C, F, F ** -0.5),
        'fc2_b': 0.02 * jax.random.normal(ks[13], (C,), jnp.float32),
    }


def prep_kernel_params(tp):
    """Pack PyTorch-layout weights into a few bf16 banks + one f32 vector bank."""
    C, H, D = D_MODEL, NHEAD, HEAD_DIM

    def qkv_bank(wq, wk, wv, scale):
        # torch Linear weight is [out, in]; per-head row blocks -> [H, D, C].
        return jnp.stack([(scale * wq).reshape(H, D, C),
                          wk.reshape(H, D, C),
                          wv.reshape(H, D, C)], axis=0).astype(jnp.bfloat16)

    def out_bank(wp):
        # out-proj consumes head-concat input; wp.T row blocks -> [H, D, C].
        return wp.T.reshape(H, D, C)

    vec_rows = jnp.stack([tp['ln1_g'], tp['ln1_b'],
                          tp['ln2_g'], tp['ln2_b'],
                          tp['ln3_g'], tp['ln3_b'],
                          tp['sa_bp'], tp['ca_bp'], tp['fc2_b']], axis=0)
    vec_bank = jnp.zeros((16, C), jnp.float32).at[:vec_rows.shape[0]].set(vec_rows)

    return {
        'sa_wqkv': qkv_bank(tp['sa_wq'], tp['sa_wk'], tp['sa_wv'], D ** -0.5),
        'ca_wqkv': qkv_bank(tp['ca_wq'], tp['ca_wk'], tp['ca_wv'], D ** -0.5),
        'wo_bank': jnp.stack([out_bank(tp['sa_wp']), out_bank(tp['ca_wp'])],
                             axis=0).astype(jnp.bfloat16),      # [2, H, D, C]
        'fc1_w': tp['fc1_w'].T.astype(jnp.bfloat16),            # [C, 4C]
        'fc2_w': tp['fc2_w'].T.astype(jnp.bfloat16),            # [4C, C]
        'vec_bank': vec_bank,                                   # [16, C] f32
        'fc1_b': tp['fc1_b'].reshape(1, -1),                    # [1, 4C] f32
    }


# ----------------------- pure-JAX reference (PyTorch semantics) ---------------
def reference_forward(x, mem, tp):
    C, H = D_MODEL, NHEAD
    D = C // H

    def ln(v, g, b):
        mu = jnp.mean(v, axis=-1, keepdims=True)
        var = jnp.mean((v - mu) ** 2, axis=-1, keepdims=True)
        return (v - mu) / jnp.sqrt(var + _LN_EPS) * g + b

    def attn(q_in, kv_in, wq, wk, wv, wp, bp):
        B, N, _ = q_in.shape
        M = kv_in.shape[1]
        q = (q_in @ wq.T).reshape(B, N, H, D)
        k = (kv_in @ wk.T).reshape(B, M, H, D)
        v = (kv_in @ wv.T).reshape(B, M, H, D)
        a = jnp.einsum('bnkc,bmkc->bknm', q, k) * (D ** -0.5)
        a = jax.nn.softmax(a, axis=-1)
        o = jnp.einsum('bknm,bmkc->bnkc', a, v).reshape(B, N, C)
        return o @ wp.T + bp

    h = ln(x, tp['ln1_g'], tp['ln1_b'])
    x = x + attn(h, h, tp['sa_wq'], tp['sa_wk'], tp['sa_wv'], tp['sa_wp'], tp['sa_bp'])
    h = ln(x, tp['ln2_g'], tp['ln2_b'])
    x = x + attn(h, mem, tp['ca_wq'], tp['ca_wk'], tp['ca_wv'], tp['ca_wp'], tp['ca_bp'])
    h = ln(x, tp['ln3_g'], tp['ln3_b'])
    fc = h @ tp['fc1_w'].T + tp['fc1_b']
    fc = 0.5 * fc * (1.0 + jax.scipy.special.erf(fc / jnp.sqrt(2.0)))
    x = x + fc @ tp['fc2_w'].T + tp['fc2_b']
    return x


# ----------------------------------- main --------------------------------------
if __name__ == "__main__":
    key = jax.random.PRNGKey(0)
    kparam, kx, km = jax.random.split(key, 3)
    torch_params = init_torch_params(kparam)
    x = jax.random.normal(kx, (BATCH, N_TGT, D_MODEL), jnp.float32)
    mem = jax.random.normal(km, (BATCH, N_MEM, D_MODEL), jnp.float32)

    kparams = prep_kernel_params(torch_params)
    out = transformer_decoder_layer(x, mem, kparams)
    out = jax.block_until_ready(out)

    assert out.shape == (BATCH, N_TGT, D_MODEL), out.shape
    assert bool(jnp.all(jnp.isfinite(out)))

    ref = reference_forward(x, mem, torch_params)
    max_err = float(jnp.max(jnp.abs(out - ref)))
    assert max_err < 5e-2, f"max abs error vs reference: {max_err}"

    print("KERNEL_OK")
</pallas_src>

<mosaic_0001>
module attributes {stable_mosaic.version = 11 : i64} {
  func.func @decoder_layer_kernel(%arg0: memref<16x32xf32, #tpu.memory_space<vmem>>, %arg1: memref<32x32xf32, #tpu.memory_space<vmem>>, %arg2: memref<3x4x8x32xbf16, #tpu.memory_space<vmem>>, %arg3: memref<3x4x8x32xbf16, #tpu.memory_space<vmem>>, %arg4: memref<2x4x8x32xbf16, #tpu.memory_space<vmem>>, %arg5: memref<32x128xbf16, #tpu.memory_space<vmem>>, %arg6: memref<128x32xbf16, #tpu.memory_space<vmem>>, %arg7: memref<16x32xf32, #tpu.memory_space<vmem>>, %arg8: memref<1x128xf32, #tpu.memory_space<vmem>>, %arg9: memref<16x32xf32, #tpu.memory_space<vmem>>) attributes {dimension_semantics = [], scalar_prefetch = 0 : i64, scratch_operands = 0 : i64, tpu.core_type = #tpu.core_type<tc>} {
    %c0 = arith.constant 0 : index
    %c0_0 = arith.constant 0 : index
    %0 = vector.load %arg0[%c0, %c0_0] : memref<16x32xf32, #tpu.memory_space<vmem>>, vector<16x32xf32>
    %c0_1 = arith.constant 0 : index
    %c0_2 = arith.constant 0 : index
    %1 = vector.load %arg1[%c0_1, %c0_2] : memref<32x32xf32, #tpu.memory_space<vmem>>, vector<32x32xf32>
    %c0_3 = arith.constant 0 : index
    %c0_4 = arith.constant 0 : index
    %2 = vector.load %arg7[%c0_3, %c0_4] : memref<16x32xf32, #tpu.memory_space<vmem>>, vector<16x32xf32>
    %c0_5 = arith.constant 0 : index
    %c0_6 = arith.constant 0 : index
    %c0_7 = arith.constant 0 : index
    %c0_8 = arith.constant 0 : index
    %3 = vector.load %arg4[%c0_5, %c0_6, %c0_7, %c0_8] : memref<2x4x8x32xbf16, #tpu.memory_space<vmem>>, vector<2x4x8x32xbf16>
    %4 = vector.extract_strided_slice %2 {offsets = [0, 0], sizes = [1, 32], strides = [1, 1]} : vector<16x32xf32> to vector<1x32xf32>
    %5 = vector.extract_strided_slice %2 {offsets = [1, 0], sizes = [1, 32], strides = [1, 1]} : vector<16x32xf32> to vector<1x32xf32>
    %cst = arith.constant dense<0.000000e+00> : vector<16xf32>
    %6 = vector.multi_reduction <add>, %0, %cst [1] : vector<16x32xf32> to vector<16xf32>
    %7 = vector.shape_cast %6 : vector<16xf32> to vector<16x1xf32>
    %cst_9 = arith.constant 3.200000e+01 : f32
    %8 = vector.broadcast %cst_9 : f32 to vector<16x1xf32>
    %9 = arith.divf %7, %8 : vector<16x1xf32>
    %10 = vector.broadcast %9 : vector<16x1xf32> to vector<16x32xf32>
    %11 = arith.subf %0, %10 : vector<16x32xf32>
    %12 = arith.mulf %11, %11 : vector<16x32xf32>
    %cst_10 = arith.constant dense<0.000000e+00> : vector<16xf32>
    %13 = vector.multi_reduction <add>, %12, %cst_10 [1] : vector<16x32xf32> to vector<16xf32>
    %14 = vector.shape_cast %13 : vector<16xf32> to vector<16x1xf32>
    %cst_11 = arith.constant 3.200000e+01 : f32
    %15 = vector.broadcast %cst_11 : f32 to vector<16x1xf32>
    %16 = arith.divf %14, %15 : vector<16x1xf32>
    %cst_12 = arith.constant 9.99999974E-6 : f32
    %17 = vector.broadcast %cst_12 : f32 to vector<16x1xf32>
    %18 = arith.addf %16, %17 : vector<16x1xf32>
    %19 = math.rsqrt %18 : vector<16x1xf32>
    %20 = vector.broadcast %19 : vector<16x1xf32> to vector<16x32xf32>
    %21 = arith.mulf %11, %20 : vector<16x32xf32>
    %22 = vector.broadcast %4 : vector<1x32xf32> to vector<16x32xf32>
    %23 = arith.mulf %21, %22 : vector<16x32xf32>
    %24 = vector.broadcast %5 : vector<1x32xf32> to vector<16x32xf32>
    %25 = arith.addf %23, %24 : vector<16x32xf32>
    %c0_13 = arith.constant 0 : index
    %c0_14 = arith.constant 0 : index
    %c0_15 = arith.constant 0 : index
    %c0_16 = arith.constant 0 : index
    %26 = vector.load %arg2[%c0_13, %c0_14, %c0_15, %c0_16] : memref<3x4x8x32xbf16, #tpu.memory_space<vmem>>, vector<3x4x8x32xbf16>
    %27 = vector.extract_strided_slice %3 {offsets = [0, 0, 0, 0], sizes = [1, 4, 8, 32], strides = [1, 1, 1, 1]} : vector<2x4x8x32xbf16> to vector<1x4x8x32xbf16>
    %28 = vector.shape_cast %27 : vector<1x4x8x32xbf16> to vector<4x8x32xbf16>
    %29 = vector.extract_strided_slice %2 {offsets = [6, 0], sizes = [1, 32], strides = [1, 1]} : vector<16x32xf32> to vector<1x32xf32>
    %30 = arith.truncf %25 : vector<16x32xf32> to vector<16x32xbf16>
    %31 = vector.shape_cast %30 : vector<16x32xbf16> to vector<1x16x32xbf16>
    %32 = vector.shape_cast %31 : vector<1x16x32xbf16> to vector<1x16x32xbf16>
    %33 = vector.broadcast %32 : vector<1x16x32xbf16> to vector<4x16x32xbf16>
    %34 = arith.truncf %25 : vector<16x32xf32> to vector<16x32xbf16>
    %35 = vector.shape_cast %34 : vector<16x32xbf16> to vector<1x16x32xbf16>
    %36 = vector.shape_cast %35 : vector<1x16x32xbf16> to vector<1x16x32xbf16>
    %37 = vector.broadcast %36 : vector<1x16x32xbf16> to vector<4x16x32xbf16>
    %38 = vector.extract_strided_slice %26 {offsets = [0, 0, 0, 0], sizes = [1, 4, 8, 32], strides = [1, 1, 1, 1]} : vector<3x4x8x32xbf16> to vector<1x4x8x32xbf16>
    %39 = vector.shape_cast %38 : vector<1x4x8x32xbf16> to vector<4x8x32xbf16>
    "tpu.trace_start"() <{level = 10 : i32, message = "hxc,hdc->hxd"}> : () -> ()
    %cst_17 = arith.constant dense<0.000000e+00> : vector<4x16x8xf32>
    %40 = tpu.matmul %33, %39, %cst_17 {dimension_numbers = #tpu.dot_dimension_numbers<[2], [2], [1], [1], [0, 0, 0, 1, 1, 1], [0], [0]>} : vector<4x16x32xbf16>, vector<4x8x32xbf16>, vector<4x16x8xf32> -> vector<4x16x8xf32>
    "tpu.trace_stop"() : () -> ()
    %41 = vector.extract_strided_slice %26 {offsets = [1, 0, 0, 0], sizes = [1, 4, 8, 32], strides = [1, 1, 1, 1]} : vector<3x4x8x32xbf16> to vector<1x4x8x32xbf16>
    %42 = vector.shape_cast %41 : vector<1x4x8x32xbf16> to vector<4x8x32xbf16>
    "tpu.trace_start"() <{level = 10 : i32, message = "hxc,hdc->hxd"}> : () -> ()
    %cst_18 = arith.constant dense<0.000000e+00> : vector<4x16x8xf32>
    %43 = tpu.matmul %37, %42, %cst_18 {dimension_numbers = #tpu.dot_dimension_numbers<[2], [2], [1], [1], [0, 0, 0, 1, 1, 1], [0], [0]>} : vector<4x16x32xbf16>, vector<4x8x32xbf16>, vector<4x16x8xf32> -> vector<4x16x8xf32>
    "tpu.trace_stop"() : () -> ()
    %44 = vector.extract_strided_slice %26 {offsets = [2, 0, 0, 0], sizes = [1, 4, 8, 32], strides = [1, 1, 1, 1]} : vector<3x4x8x32xbf16> to vector<1x4x8x32xbf16>
    %45 = vector.shape_cast %44 : vector<1x4x8x32xbf16> to vector<4x8x32xbf16>
    "tpu.trace_start"() <{level = 10 : i32, message = "hxc,hdc->hxd"}> : () -> ()
    %cst_19 = arith.constant dense<0.000000e+00> : vector<4x16x8xf32>
    %46 = tpu.matmul %37, %45, %cst_19 {dimension_numbers = #tpu.dot_dimension_numbers<[2], [2], [1], [1], [0, 0, 0, 1, 1, 1], [0], [0]>} : vector<4x16x32xbf16>, vector<4x8x32xbf16>, vector<4x16x8xf32> -> vector<4x16x8xf32>
    "tpu.trace_stop"() : () -> ()
    %47 = vector.shape_cast %40 : vector<4x16x8xf32> to vector<8x8x8xf32>
    %48 = arith.truncf %47 : vector<8x8x8xf32> to vector<8x8x8xbf16>
    %49 = vector.shape_cast %43 : vector<4x16x8xf32> to vector<8x8x8xf32>
    %50 = arith.truncf %49 : vector<8x8x8xf32> to vector<8x8x8xbf16>
    %51 = vector.shape_cast %46 : vector<4x16x8xf32> to vector<8x8x8xf32>
    %52 = arith.truncf %51 : vector<8x8x8xf32> to vector<8x8x8xbf16>
    "tpu.trace_start"() <{level = 10 : i32, message = "gnd,gmd->gnm"}> : () -> ()
    %cst_20 = arith.constant dense<0.000000e+00> : vector<8x8x8xf32>
    %53 = tpu.matmul %48, %50, %cst_20 {dimension_numbers = #tpu.dot_dimension_numbers<[2], [2], [1], [1], [0, 0, 0, 1, 1, 1], [0], [0]>} : vector<8x8x8xbf16>, vector<8x8x8xbf16>, vector<8x8x8xf32> -> vector<8x8x8xf32>
    "tpu.trace_stop"() : () -> ()
    %cst_21 = arith.constant dense<0xFF800000> : vector<8x8xf32>
    %54 = vector.multi_reduction <maximumf>, %53, %cst_21 [2] : vector<8x8x8xf32> to vector<8x8xf32>
    %55 = vector.shape_cast %54 : vector<8x8xf32> to vector<8x8x1xf32>
    %56 = vector.broadcast %55 : vector<8x8x1xf32> to vector<8x8x8xf32>
    %57 = arith.subf %53, %56 : vector<8x8x8xf32>
    %58 = math.exp %57 : vector<8x8x8xf32>
    %cst_22 = arith.constant dense<0.000000e+00> : vector<8x8xf32>
    %59 = vector.multi_reduction <add>, %58, %cst_22 [2] : vector<8x8x8xf32> to vector<8x8xf32>
    %60 = vector.shape_cast %59 : vector<8x8xf32> to vector<8x8x1xf32>
    %61 = tpu.reciprocal %60 {approx = true} : vector<8x8x1xf32> -> vector<8x8x1xf32>
    %62 = vector.broadcast %61 : vector<8x8x1xf32> to vector<8x8x8xf32>
    %63 = arith.mulf %58, %62 : vector<8x8x8xf32>
    %64 = arith.truncf %63 : vector<8x8x8xf32> to vector<8x8x8xbf16>
    "tpu.trace_start"() <{level = 10 : i32, message = "gnm,gmd->gnd"}> : () -> ()
    %cst_23 = arith.constant dense<0.000000e+00> : vector<8x8x8xf32>
    %65 = tpu.matmul %64, %52, %cst_23 {dimension_numbers = #tpu.dot_dimension_numbers<[2], [1], [1], [2], [0, 0, 0, 1, 1, 2], [0], [0]>} : vector<8x8x8xbf16>, vector<8x8x8xbf16>, vector<8x8x8xf32> -> vector<8x8x8xf32>
    "tpu.trace_stop"() : () -> ()
    %66 = vector.shape_cast %65 : vector<8x8x8xf32> to vector<4x16x8xf32>
    %67 = arith.truncf %66 : vector<4x16x8xf32> to vector<4x16x8xbf16>
    "tpu.trace_start"() <{level = 10 : i32, message = "hxd,hdc->hxc"}> : () -> ()
    %cst_24 = arith.constant dense<0.000000e+00> : vector<4x16x32xf32>
    %68 = tpu.matmul %67, %28, %cst_24 {dimension_numbers = #tpu.dot_dimension_numbers<[2], [1], [1], [2], [0, 0, 0, 1, 1, 2], [0], [0]>} : vector<4x16x8xbf16>, vector<4x8x32xbf16>, vector<4x16x32xf32> -> vector<4x16x32xf32>
    "tpu.trace_stop"() : () -> ()
    %cst_25 = arith.constant dense<0.000000e+00> : vector<16x32xf32>
    %69 = vector.multi_reduction <add>, %68, %cst_25 [0] : vector<4x16x32xf32> to vector<16x32xf32>
    %70 = vector.broadcast %29 : vector<1x32xf32> to vector<16x32xf32>
    %71 = arith.addf %69, %70 : vector<16x32xf32>
    %72 = arith.addf %0, %71 : vector<16x32xf32>
    %73 = vector.extract_strided_slice %2 {offsets = [2, 0], sizes = [1, 32], strides = [1, 1]} : vector<16x32xf32> to vector<1x32xf32>
    %74 = vector.extract_strided_slice %2 {offsets = [3, 0], sizes = [1, 32], strides = [1, 1]} : vector<16x32xf32> to vector<1x32xf32>
    %cst_26 = arith.constant dense<0.000000e+00> : vector<16xf32>
    %75 = vector.multi_reduction <add>, %72, %cst_26 [1] : vector<16x32xf32> to vector<16xf32>
    %76 = vector.shape_cast %75 : vector<16xf32> to vector<16x1xf32>
    %cst_27 = arith.constant 3.200000e+01 : f32
    %77 = vector.broadcast %cst_27 : f32 to vector<16x1xf32>
    %78 = arith.divf %76, %77 : vector<16x1xf32>
    %79 = vector.broadcast %78 : vector<16x1xf32> to vector<16x32xf32>
    %80 = arith.subf %72, %79 : vector<16x32xf32>
    %81 = arith.mulf %80, %80 : vector<16x32xf32>
    %cst_28 = arith.constant dense<0.000000e+00> : vector<16xf32>
    %82 = vector.multi_reduction <add>, %81, %cst_28 [1] : vector<16x32xf32> to vector<16xf32>
    %83 = vector.shape_cast %82 : vector<16xf32> to vector<16x1xf32>
    %cst_29 = arith.constant 3.200000e+01 : f32
    %84 = vector.broadcast %cst_29 : f32 to vector<16x1xf32>
    %85 = arith.divf %83, %84 : vector<16x1xf32>
    %cst_30 = arith.constant 9.99999974E-6 : f32
    %86 = vector.broadcast %cst_30 : f32 to vector<16x1xf32>
    %87 = arith.addf %85, %86 : vector<16x1xf32>
    %88 = math.rsqrt %87 : vector<16x1xf32>
    %89 = vector.broadcast %88 : vector<16x1xf32> to vector<16x32xf32>
    %90 = arith.mulf %80, %89 : vector<16x32xf32>
    %91 = vector.broadcast %73 : vector<1x32xf32> to vector<16x32xf32>
    %92 = arith.mulf %90, %91 : vector<16x32xf32>
    %93 = vector.broadcast %74 : vector<1x32xf32> to vector<16x32xf32>
    %94 = arith.addf %92, %93 : vector<16x32xf32>
    %c0_31 = arith.constant 0 : index
    %c0_32 = arith.constant 0 : index
    %c0_33 = arith.constant 0 : index
    %c0_34 = arith.constant 0 : index
    %95 = vector.load %arg3[%c0_31, %c0_32, %c0_33, %c0_34] : memref<3x4x8x32xbf16, #tpu.memory_space<vmem>>, vector<3x4x8x32xbf16>
    %96 = vector.extract_strided_slice %3 {offsets = [1, 0, 0, 0], sizes = [1, 4, 8, 32], strides = [1, 1, 1, 1]} : vector<2x4x8x32xbf16> to vector<1x4x8x32xbf16>
    %97 = vector.shape_cast %96 : vector<1x4x8x32xbf16> to vector<4x8x32xbf16>
    %98 = vector.extract_strided_slice %2 {offsets = [7, 0], sizes = [1, 32], strides = [1, 1]} : vector<16x32xf32> to vector<1x32xf32>
    %99 = arith.truncf %94 : vector<16x32xf32> to vector<16x32xbf16>
    %100 = vector.shape_cast %99 : vector<16x32xbf16> to vector<1x16x32xbf16>
    %101 = vector.shape_cast %100 : vector<1x16x32xbf16> to vector<1x16x32xbf16>
    %102 = vector.broadcast %101 : vector<1x16x32xbf16> to vector<4x16x32xbf16>
    %103 = arith.truncf %1 : vector<32x32xf32> to vector<32x32xbf16>
    %104 = vector.shape_cast %103 : vector<32x32xbf16> to vector<1x32x32xbf16>
    %105 = vector.shape_cast %104 : vector<1x32x32xbf16> to vector<1x32x32xbf16>
    %106 = vector.broadcast %105 : vector<1x32x32xbf16> to vector<4x32x32xbf16>
    %107 = vector.extract_strided_slice %95 {offsets = [0, 0, 0, 0], sizes = [1, 4, 8, 32], strides = [1, 1, 1, 1]} : vector<3x4x8x32xbf16> to vector<1x4x8x32xbf16>
    %108 = vector.shape_cast %107 : vector<1x4x8x32xbf16> to vector<4x8x32xbf16>
    "tpu.trace_start"() <{level = 10 : i32, message = "hxc,hdc->hxd"}> : () -> ()
    %cst_35 = arith.constant dense<0.000000e+00> : vector<4x16x8xf32>
    %109 = tpu.matmul %102, %108, %cst_35 {dimension_numbers = #tpu.dot_dimension_numbers<[2], [2], [1], [1], [0, 0, 0, 1, 1, 1], [0], [0]>} : vector<4x16x32xbf16>, vector<4x8x32xbf16>, vector<4x16x8xf32> -> vector<4x16x8xf32>
    "tpu.trace_stop"() : () -> ()
    %110 = vector.extract_strided_slice %95 {offsets = [1, 0, 0, 0], sizes = [1, 4, 8, 32], strides = [1, 1, 1, 1]} : vector<3x4x8x32xbf16> to vector<1x4x8x32xbf16>
    %111 = vector.shape_cast %110 : vector<1x4x8x32xbf16> to vector<4x8x32xbf16>
    "tpu.trace_start"() <{level = 10 : i32, message = "hxc,hdc->hxd"}> : () -> ()
    %cst_36 = arith.constant dense<0.000000e+00> : vector<4x32x8xf32>
    %112 = tpu.matmul %106, %111, %cst_36 {dimension_numbers = #tpu.dot_dimension_numbers<[2], [2], [1], [1], [0, 0, 0, 1, 1, 1], [0], [0]>} : vector<4x32x32xbf16>, vector<4x8x32xbf16>, vector<4x32x8xf32> -> vector<4x32x8xf32>
    "tpu.trace_stop"() : () -> ()
    %113 = vector.extract_strided_slice %95 {offsets = [2, 0, 0, 0], sizes = [1, 4, 8, 32], strides = [1, 1, 1, 1]} : vector<3x4x8x32xbf16> to vector<1x4x8x32xbf16>
    %114 = vector.shape_cast %113 : vector<1x4x8x32xbf16> to vector<4x8x32xbf16>
    "tpu.trace_start"() <{level = 10 : i32, message = "hxc,hdc->hxd"}> : () -> ()
    %cst_37 = arith.constant dense<0.000000e+00> : vector<4x32x8xf32>
    %115 = tpu.matmul %106, %114, %cst_37 {dimension_numbers = #tpu.dot_dimension_numbers<[2], [2], [1], [1], [0, 0, 0, 1, 1, 1], [0], [0]>} : vector<4x32x32xbf16>, vector<4x8x32xbf16>, vector<4x32x8xf32> -> vector<4x32x8xf32>
    "tpu.trace_stop"() : () -> ()
    %116 = vector.shape_cast %109 : vector<4x16x8xf32> to vector<8x8x8xf32>
    %117 = arith.truncf %116 : vector<8x8x8xf32> to vector<8x8x8xbf16>
    %118 = vector.shape_cast %112 : vector<4x32x8xf32> to vector<8x16x8xf32>
    %119 = arith.truncf %118 : vector<8x16x8xf32> to vector<8x16x8xbf16>
    %120 = vector.shape_cast %115 : vector<4x32x8xf32> to vector<8x16x8xf32>
    %121 = arith.truncf %120 : vector<8x16x8xf32> to vector<8x16x8xbf16>
    "tpu.trace_start"() <{level = 10 : i32, message = "gnd,gmd->gnm"}> : () -> ()
    %cst_38 = arith.constant dense<0.000000e+00> : vector<8x8x16xf32>
    %122 = tpu.matmul %117, %119, %cst_38 {dimension_numbers = #tpu.dot_dimension_numbers<[2], [2], [1], [1], [0, 0, 0, 1, 1, 1], [0], [0]>} : vector<8x8x8xbf16>, vector<8x16x8xbf16>, vector<8x8x16xf32> -> vector<8x8x16xf32>
    "tpu.trace_stop"() : () -> ()
    %cst_39 = arith.constant dense<0xFF800000> : vector<8x8xf32>
    %123 = vector.multi_reduction <maximumf>, %122, %cst_39 [2] : vector<8x8x16xf32> to vector<8x8xf32>
    %124 = vector.shape_cast %123 : vector<8x8xf32> to vector<8x8x1xf32>
    %125 = vector.broadcast %124 : vector<8x8x1xf32> to vector<8x8x16xf32>
    %126 = arith.subf %122, %125 : vector<8x8x16xf32>
    %127 = math.exp %126 : vector<8x8x16xf32>
    %cst_40 = arith.constant dense<0.000000e+00> : vector<8x8xf32>
    %128 = vector.multi_reduction <add>, %127, %cst_40 [2] : vector<8x8x16xf32> to vector<8x8xf32>
    %129 = vector.shape_cast %128 : vector<8x8xf32> to vector<8x8x1xf32>
    %130 = tpu.reciprocal %129 {approx = true} : vector<8x8x1xf32> -> vector<8x8x1xf32>
    %131 = vector.broadcast %130 : vector<8x8x1xf32> to vector<8x8x16xf32>
    %132 = arith.mulf %127, %131 : vector<8x8x16xf32>
    %133 = arith.truncf %132 : vector<8x8x16xf32> to vector<8x8x16xbf16>
    "tpu.trace_start"() <{level = 10 : i32, message = "gnm,gmd->gnd"}> : () -> ()
    %cst_41 = arith.constant dense<0.000000e+00> : vector<8x8x8xf32>
    %134 = tpu.matmul %133, %121, %cst_41 {dimension_numbers = #tpu.dot_dimension_numbers<[2], [1], [1], [2], [0, 0, 0, 1, 1, 2], [0], [0]>} : vector<8x8x16xbf16>, vector<8x16x8xbf16>, vector<8x8x8xf32> -> vector<8x8x8xf32>
    "tpu.trace_stop"() : () -> ()
    %135 = vector.shape_cast %134 : vector<8x8x8xf32> to vector<4x16x8xf32>
    %136 = arith.truncf %135 : vector<4x16x8xf32> to vector<4x16x8xbf16>
    "tpu.trace_start"() <{level = 10 : i32, message = "hxd,hdc->hxc"}> : () -> ()
    %cst_42 = arith.constant dense<0.000000e+00> : vector<4x16x32xf32>
    %137 = tpu.matmul %136, %97, %cst_42 {dimension_numbers = #tpu.dot_dimension_numbers<[2], [1], [1], [2], [0, 0, 0, 1, 1, 2], [0], [0]>} : vector<4x16x8xbf16>, vector<4x8x32xbf16>, vector<4x16x32xf32> -> vector<4x16x32xf32>
    "tpu.trace_stop"() : () -> ()
    %cst_43 = arith.constant dense<0.000000e+00> : vector<16x32xf32>
    %138 = vector.multi_reduction <add>, %137, %cst_43 [0] : vector<4x16x32xf32> to vector<16x32xf32>
    %139 = vector.broadcast %98 : vector<1x32xf32> to vector<16x32xf32>
    %140 = arith.addf %138, %139 : vector<16x32xf32>
    %141 = arith.addf %72, %140 : vector<16x32xf32>
    %142 = vector.extract_strided_slice %2 {offsets = [4, 0], sizes = [1, 32], strides = [1, 1]} : vector<16x32xf32> to vector<1x32xf32>
    %143 = vector.extract_strided_slice %2 {offsets = [5, 0], sizes = [1, 32], strides = [1, 1]} : vector<16x32xf32> to vector<1x32xf32>
    %cst_44 = arith.constant dense<0.000000e+00> : vector<16xf32>
    %144 = vector.multi_reduction <add>, %141, %cst_44 [1] : vector<16x32xf32> to vector<16xf32>
    %145 = vector.shape_cast %144 : vector<16xf32> to vector<16x1xf32>
    %cst_45 = arith.constant 3.200000e+01 : f32
    %146 = vector.broadcast %cst_45 : f32 to vector<16x1xf32>
    %147 = arith.divf %145, %146 : vector<16x1xf32>
    %148 = vector.broadcast %147 : vector<16x1xf32> to vector<16x32xf32>
    %149 = arith.subf %141, %148 : vector<16x32xf32>
    %150 = arith.mulf %149, %149 : vector<16x32xf32>
    %cst_46 = arith.constant dense<0.000000e+00> : vector<16xf32>
    %151 = vector.multi_reduction <add>, %150, %cst_46 [1] : vector<16x32xf32> to vector<16xf32>
    %152 = vector.shape_cast %151 : vector<16xf32> to vector<16x1xf32>
    %cst_47 = arith.constant 3.200000e+01 : f32
    %153 = vector.broadcast %cst_47 : f32 to vector<16x1xf32>
    %154 = arith.divf %152, %153 : vector<16x1xf32>
    %cst_48 = arith.constant 9.99999974E-6 : f32
    %155 = vector.broadcast %cst_48 : f32 to vector<16x1xf32>
    %156 = arith.addf %154, %155 : vector<16x1xf32>
    %157 = math.rsqrt %156 : vector<16x1xf32>
    %158 = vector.broadcast %157 : vector<16x1xf32> to vector<16x32xf32>
    %159 = arith.mulf %149, %158 : vector<16x32xf32>
    %160 = vector.broadcast %142 : vector<1x32xf32> to vector<16x32xf32>
    %161 = arith.mulf %159, %160 : vector<16x32xf32>
    %162 = vector.broadcast %143 : vector<1x32xf32> to vector<16x32xf32>
    %163 = arith.addf %161, %162 : vector<16x32xf32>
    %164 = arith.truncf %163 : vector<16x32xf32> to vector<16x32xbf16>
    %c0_49 = arith.constant 0 : index
    %c0_50 = arith.constant 0 : index
    %165 = vector.load %arg5[%c0_49, %c0_50] : memref<32x128xbf16, #tpu.memory_space<vmem>>, vector<32x128xbf16>
    %cst_51 = arith.constant dense<0.000000e+00> : vector<16x128xf32>
    %166 = tpu.matmul %164, %165, %cst_51 {dimension_numbers = #tpu.dot_dimension_numbers<[1], [0], [0], [1], [0, 0, 1, 1], [], []>} : vector<16x32xbf16>, vector<32x128xbf16>, vector<16x128xf32> -> vector<16x128xf32>
    %c0_52 = arith.constant 0 : index
    %c0_53 = arith.constant 0 : index
    %167 = vector.load %arg8[%c0_52, %c0_53] : memref<1x128xf32, #tpu.memory_space<vmem>>, vector<1x128xf32>
    %168 = vector.broadcast %167 : vector<1x128xf32> to vector<16x128xf32>
    %169 = arith.addf %166, %168 : vector<16x128xf32>
    %cst_54 = arith.constant 5.000000e-01 : f32
    %170 = vector.broadcast %cst_54 : f32 to vector<16x128xf32>
    %171 = arith.mulf %170, %169 : vector<16x128xf32>
    %cst_55 = arith.constant 0.707106769 : f32
    %172 = vector.broadcast %cst_55 : f32 to vector<16x128xf32>
    %173 = arith.mulf %169, %172 : vector<16x128xf32>
    %174 = math.absf %173 : vector<16x128xf32>
    %cst_56 = arith.constant 0.327591091 : f32
    %175 = vector.broadcast %cst_56 : f32 to vector<16x128xf32>
    %176 = arith.mulf %175, %174 : vector<16x128xf32>
    %cst_57 = arith.constant 1.000000e+00 : f32
    %177 = vector.broadcast %cst_57 : f32 to vector<16x128xf32>
    %178 = arith.addf %177, %176 : vector<16x128xf32>
    %179 = tpu.reciprocal %178 {approx = true} : vector<16x128xf32> -> vector<16x128xf32>
    %cst_58 = arith.constant 1.06140542 : f32
    %180 = vector.broadcast %cst_58 : f32 to vector<16x128xf32>
    %181 = arith.mulf %180, %179 : vector<16x128xf32>
    %cst_59 = arith.constant -1.45315206 : f32
    %182 = vector.broadcast %cst_59 : f32 to vector<16x128xf32>
    %183 = arith.addf %181, %182 : vector<16x128xf32>
    %184 = arith.mulf %183, %179 : vector<16x128xf32>
    %cst_60 = arith.constant 1.42141378 : f32
    %185 = vector.broadcast %cst_60 : f32 to vector<16x128xf32>
    %186 = arith.addf %184, %185 : vector<16x128xf32>
    %187 = arith.mulf %186, %179 : vector<16x128xf32>
    %cst_61 = arith.constant -0.284496725 : f32
    %188 = vector.broadcast %cst_61 : f32 to vector<16x128xf32>
    %189 = arith.addf %187, %188 : vector<16x128xf32>
    %190 = arith.mulf %189, %179 : vector<16x128xf32>
    %cst_62 = arith.constant 0.254829586 : f32
    %191 = vector.broadcast %cst_62 : f32 to vector<16x128xf32>
    %192 = arith.addf %190, %191 : vector<16x128xf32>
    %193 = arith.mulf %192, %179 : vector<16x128xf32>
    %cst_63 = arith.constant 0.000000e+00 : f32
    %194 = vector.broadcast %cst_63 : f32 to vector<16x128xf32>
    %195 = arith.subf %194, %174 : vector<16x128xf32>
    %196 = arith.mulf %195, %174 : vector<16x128xf32>
    %197 = math.exp %196 : vector<16x128xf32>
    %198 = arith.mulf %193, %197 : vector<16x128xf32>
    %cst_64 = arith.constant 1.000000e+00 : f32
    %199 = vector.broadcast %cst_64 : f32 to vector<16x128xf32>
    %200 = arith.subf %199, %198 : vector<16x128xf32>
    %cst_65 = arith.constant 0.000000e+00 : f32
    %201 = vector.broadcast %cst_65 : f32 to vector<16x128xf32>
    %202 = arith.cmpf oge, %173, %201 : vector<16x128xf32>
    %cst_66 = arith.constant 0.000000e+00 : f32
    %203 = vector.broadcast %cst_66 : f32 to vector<16x128xf32>
    %204 = arith.subf %203, %200 : vector<16x128xf32>
    %205 = arith.select %202, %200, %204 : vector<16x128xi1>, vector<16x128xf32>
    %cst_67 = arith.constant 1.000000e+00 : f32
    %206 = vector.broadcast %cst_67 : f32 to vector<16x128xf32>
    %207 = arith.addf %206, %205 : vector<16x128xf32>
    %208 = arith.mulf %171, %207 : vector<16x128xf32>
    %209 = arith.truncf %208 : vector<16x128xf32> to vector<16x128xbf16>
    %c0_68 = arith.constant 0 : index
    %c0_69 = arith.constant 0 : index
    %210 = vector.load %arg6[%c0_68, %c0_69] : memref<128x32xbf16, #tpu.memory_space<vmem>>, vector<128x32xbf16>
    %cst_70 = arith.constant dense<0.000000e+00> : vector<16x32xf32>
    %211 = tpu.matmul %209, %210, %cst_70 {dimension_numbers = #tpu.dot_dimension_numbers<[1], [0], [0], [1], [0, 0, 1, 1], [], []>} : vector<16x128xbf16>, vector<128x32xbf16>, vector<16x32xf32> -> vector<16x32xf32>
    %212 = vector.extract_strided_slice %2 {offsets = [8, 0], sizes = [1, 32], strides = [1, 1]} : vector<16x32xf32> to vector<1x32xf32>
    %213 = vector.broadcast %212 : vector<1x32xf32> to vector<16x32xf32>
    %214 = arith.addf %211, %213 : vector<16x32xf32>
    %215 = arith.addf %141, %214 : vector<16x32xf32>
    %c0_71 = arith.constant 0 : index
    %c0_72 = arith.constant 0 : index
    %216 = vector.load %arg9[%c0_71, %c0_72] : memref<16x32xf32, #tpu.memory_space<vmem>>, vector<16x32xf32>
    tpu.vector_store %arg9[%c0_71, %c0_72], %215 {strides = array<i32>} : memref<16x32xf32, #tpu.memory_space<vmem>>, vector<16x32xf32>,
    return
  }
}

</mosaic_0001>

<bundles_post_ra>
// kernel: tpu_custom_call.1
= control target key start
LH: loop header
LB: loop body
LE: loop exit
PB: predicated region body
PF: predicated region fallthrough
CT: control target
= control target key end

     0   :  { %14 = vsyncpa [#allocation3], 0  ;;  %s5466_s0 = inlined_call_operand.hbm [shape: f32[16,32], index: 0, kind: input, shape index: {}]   ;;  %s5467_s1 = inlined_call_operand.vmem [shape: f32[32,32], index: 1, kind: input, shape index: {}]   ;;  %s5468_s2 = inlined_call_operand.vmem [shape: bf16[3,4,8,32], index: 2, kind: input, shape index: {}]   ;;  %s5469_s3 = inlined_call_operand.hbm [shape: bf16[3,4,8,32], index: 3, kind: input, shape index: {}]   ;;  %s5470_s4 = inlined_call_operand.hbm [shape: bf16[2,4,8,32], index: 4, kind: input, shape index: {}]   ;;  %s5471_s5 = inlined_call_operand.hbm [shape: bf16[32,128], index: 5, kind: input, shape index: {}]   ;;  %s5472_s6 = inlined_call_operand.vmem [shape: bf16[128,32], index: 6, kind: input, shape index: {}]   ;;  %s5473_s7 = inlined_call_operand.hbm [shape: f32[16,32], index: 7, kind: input, shape index: {}]   ;;  %s5474_s8 = inlined_call_operand.vmem [shape: f32[1,128], index: 8, kind: input, shape index: {}]   ;;  %s5475_s9 = inlined_call_operand.hbm [shape: f32[16,32], index: 9, kind: output, shape index: {}]  }
   0x1   :  { %15 = vsyncpa [#allocation6], 0 }
   0x2   :  { %16 = vsyncpa [#allocation9], 0 }
   0x3   :  { %17 = vsyncpa [#allocation4], 0  ;;  %s4667_s30 = smov [#allocation5]   ;;  %s4527_s13 = scalar_lea.hbm %s5469_s3, 768 }
   0x4   :  { %s39_s10 = sshll.u32 %s4667_s30, 4  ;;  %p4528_p0 = scmp.ne.s32.totalorder %s5469_s3, %s4527_s13  ;;  %s40_s10 = int_to_ptr.vmem [resolvable:$true] %s39_s10 }
   0x5   :  { %p4531_p1 = scmp.lt.u32.totalorder %s4527_s13, %s5469_s3 }
   0x7   :  { %p4533_p2 = pnand %p4531_p1, %p4528_p0 }
   0x9   :  { %4536 = shalt.err (!%p4533_p2)
}
   0xa   :  { %s4537_s18 = scalar_lea.vmem %s40_s10, 768  ;;  %p4542_p4 = scmp.lt.s32.totalorder %s40_s10, %s40_s10 }
   0xb   :  { %p4538_p3 = scmp.ne.s32.totalorder %s40_s10, %s4537_s18  ;;  %p4543_p5 = scmp.lt.s32.totalorder %s4537_s18, %s4537_s18 }
   0xd   :  { %p4544_p6 = por %p4543_p5, %p4542_p4 }
   0xf   :  { %p4545_p7 = pnand %p4544_p6, %p4538_p3 }
  0x11   :  { %4548 = shalt.err (!%p4545_p7)
}
  0x12   :  { %s4668_s19 = smov 64   ;;  %s4669_s20 = smov 4  }
  0x13   :  { %45 = dma.hbm_to_vmem [thread:$0]  %s5469_s3, 768, %s40_s10, [#allocation6], %s4668_s19, %s4668_s19, %s4669_s20  }
  0x14   :  { %s4670_s23 = smov [#allocation8]   ;;  %s4671_s25 = smov [#allocation2]  }
  0x15   :  { %s63_s24 = sshll.u32 %s4670_s23, 4  ;;  %s23_s26 = sshll.u32 %s4671_s25, 4  ;;  %s64_s24 = int_to_ptr.vmem [resolvable:$true] %s63_s24  ;;  %s24_s26 = int_to_ptr.vmem [resolvable:$true] %s23_s26 }
  0x16   :  { %s4549_s29 = scalar_lea.hbm %s5471_s5, 256 }
  0x17   :  { %p4550_p8 = scmp.ne.s32.totalorder %s5471_s5, %s4549_s29  ;;  %p4553_p9 = scmp.lt.u32.totalorder %s4549_s29, %s5471_s5 }
  0x19   :  { %p4555_p10 = pnand %p4553_p9, %p4550_p8 }
  0x1b   :  { %4558 = shalt.err (!%p4555_p10)
}
  0x1c   :  { %s4559_s3 = scalar_lea.vmem %s64_s24, 256  ;;  %p4564_p12 = scmp.lt.s32.totalorder %s64_s24, %s64_s24 }
  0x1d   :  { %p4560_p11 = scmp.ne.s32.totalorder %s64_s24, %s4559_s3  ;;  %p4565_p13 = scmp.lt.s32.totalorder %s4559_s3, %s4559_s3 }
  0x1f   :  { %p4566_p0 = por %p4565_p13, %p4564_p12 }
  0x21   :  { %p4567_p1 = pnand %p4566_p0, %p4560_p11 }
  0x23   :  { %4570 = shalt.err (!%p4567_p1)
}
  0x24   :  { %69 = dma.hbm_to_vmem [thread:$0]  %s5471_s5, 256, %s64_s24, [#allocation9], %s4668_s19, %s4668_s19, %s4669_s20  }
  0x25   :  { %s4571_s17 = scalar_lea.hbm %s5466_s0, 256 }
  0x26   :  { %p4572_p2 = scmp.ne.s32.totalorder %s5466_s0, %s4571_s17  ;;  %p4575_p3 = scmp.lt.u32.totalorder %s4571_s17, %s5466_s0 }
  0x28   :  { %p4577_p4 = pnand %p4575_p3, %p4572_p2 }
  0x2a   :  { %4580 = shalt.err (!%p4577_p4)
}
  0x2b   :  { %s4581_s25 = scalar_lea.vmem %s24_s26, 256  ;;  %p4586_p6 = scmp.lt.s32.totalorder %s24_s26, %s24_s26 }
  0x2c   :  { %p4582_p5 = scmp.ne.s32.totalorder %s24_s26, %s4581_s25  ;;  %p4587_p7 = scmp.lt.s32.totalorder %s4581_s25, %s4581_s25 }
  0x2e   :  { %p4588_p8 = por %p4587_p7, %p4586_p6 }
  0x30   :  { %p4589_p9 = pnand %p4588_p8, %p4582_p5 }
  0x32   :  { %4592 = shalt.err (!%p4589_p9)
}
  0x33   :  { %s4672_s5 = smov 128   ;;  %s4673_s24 = smov 8  }
  0x34   :  { %29 = dma.hbm_to_vmem [thread:$0]  %s5466_s0, 256, %s24_s26, [#allocation3], %s4672_s5, %s4672_s5, %s4673_s24  }
  0x35   :  { %s4674_s29 = smov [#allocation7]   ;;  %s4675_s11 = smov [#allocation10]  }
  0x36   :  { %s51_s30 = sshll.u32 %s4674_s29, 4  ;;  %s77_s12 = sshll.u32 %s4675_s11, 4  ;;  %s52_s30 = int_to_ptr.vmem [resolvable:$true] %s51_s30  ;;  %s78_s12 = int_to_ptr.vmem [resolvable:$true] %s77_s12 }
  0x37   :  { %s4593_s10 = scalar_lea.hbm %s5470_s4, 512 }
  0x38   :  { %p4594_p10 = scmp.ne.s32.totalorder %s5470_s4, %s4593_s10  ;;  %p4597_p11 = scmp.lt.u32.totalorder %s4593_s10, %s5470_s4 }
  0x3a   :  { %p4599_p12 = pnand %p4597_p11, %p4594_p10 }
  0x3c   :  { %4602 = shalt.err (!%p4599_p12)
}
  0x3d   :  { %s4603_s0 = scalar_lea.vmem %s52_s30, 512  ;;  %p4608_p0 = scmp.lt.s32.totalorder %s52_s30, %s52_s30 }
  0x3e   :  { %p4604_p13 = scmp.ne.s32.totalorder %s52_s30, %s4603_s0  ;;  %p4609_p1 = scmp.lt.s32.totalorder %s4603_s0, %s4603_s0 }
  0x40   :  { %p4610_p2 = por %p4609_p1, %p4608_p0 }
  0x42   :  { %p4611_p3 = pnand %p4610_p2, %p4604_p13 }
  0x44   :  { %4614 = shalt.err (!%p4611_p3)
}
  0x45   :  { %57 = dma.hbm_to_vmem [thread:$0]  %s5470_s4, 512, %s52_s30, [#allocation6], %s4668_s19, %s4668_s19, %s4669_s20  }
  0x46   :  { %s4615_s23 = scalar_lea.hbm %s5473_s7, 256 }
  0x47   :  { %p4616_p4 = scmp.ne.s32.totalorder %s5473_s7, %s4615_s23  ;;  %p4619_p5 = scmp.lt.u32.totalorder %s4615_s23, %s5473_s7 }
  0x49   :  { %p4621_p6 = pnand %p4619_p5, %p4616_p4 }
  0x4b   :  { %4624 = shalt.err (!%p4621_p6)
}
  0x4c   :  { %s4625_s11 = scalar_lea.vmem %s78_s12, 256  ;;  %p4630_p8 = scmp.lt.s32.totalorder %s78_s12, %s78_s12 }
  0x4d   :  { %p4626_p7 = scmp.ne.s32.totalorder %s78_s12, %s4625_s11  ;;  %p4631_p9 = scmp.lt.s32.totalorder %s4625_s11, %s4625_s11 }
  0x4f   :  { %p4632_p10 = por %p4631_p9, %p4630_p8 }
  0x51   :  { %p4633_p11 = pnand %p4632_p10, %p4626_p7 }
  0x53   :  { %4636 = shalt.err (!%p4633_p11)
}
  0x54   :  { %83 = dma.hbm_to_vmem [thread:$0]  %s5473_s7, 256, %s78_s12, [#allocation9], %s4672_s5, %s4672_s5, %s4673_s24  }
  0x55   :  { %4659 = dma.done.wait [#allocation3], 256  }
  0x56   :  { %4660 = vsyncadd [#allocation3], 4294967040 }
  0x57   :  { %4661 = dma.done.wait [#allocation6], 1280  }
  0x58   :  { %4662 = vsyncadd [#allocation6], 4294966016 }
  0x59   :  { %4663 = dma.done.wait [#allocation9], 512  }
  0x5a   :  { %4664 = vsyncadd [#allocation9], 4294966784  ;;  %vm118_vm0 = vcmask 261120   ;;  %v102_v0 = vld [vmem:[#allocation2] sm:$0xff]  ;;  %v103_v1 = vld [vmem:[#allocation2 + $0x8] sm:$0xff]  ;;  %v4676_v16 = vmov 0.0   ;;  %v146_v22 = vlaneseq }
  0x5b   :  { %v119_v2 = vsel %vm118_vm0, %v102_v0, 0.0  ;;  %v122_v3 = vsel %vm118_vm0, %v103_v1, 0.0  ;;  %v158_v14 = vld [vmem:[%s5468_s2] sm:$0xf]  ;;  %v161_v15 = vld [vmem:[%s5468_s2 + $0xc] sm:$0xf]  ;;  %3998 = vmatprep.subr.bf16.mxu0 %v4676_v16  ;;  %4016 = vmatprep.subr.bf16.mxu1 %v4676_v16 }
  0x5c   :  { %120 = vadd.xlane.f32.xlu0 %v119_v2  ;;  %v175_v17 = vsel %vm118_vm0, %v158_v14, 0  ;;  %v307_v18 = vsel %vm118_vm0, %v161_v15, 0  ;;  %vm4677_vm1 = vmmov 0   ;;  %v4824_v26 = vshrl.u32 %v146_v22, 7  ;;  %v4827_v28 = vld [vmem:[#allocation10] sm:$0xff] }
  0x5d   :  { %3999 = vmatpush3.bf16.xpose.msra.mxu0 %v175_v17  ;;  %4017 = vmatpush3.bf16.xpose.msra.mxu1 %v307_v18  ;;  %v159_v38 = vld [vmem:[%s5468_s2 + $0x4] sm:$0xf]  ;;  %v163_v39 = vld [vmem:[%s5468_s2 + $0x14] sm:$0xf]  ;;  %v160_v45 = vld [vmem:[%s5468_s2 + $0x8] sm:$0xf] }
  0x5e   :  { %4004 = vmatprep.subr.bf16.mxu0 %v4676_v16  ;;  %4028 = vmatprep.subr.bf16.mxu1 %v4676_v16  ;;  %v148_v27 = vsub.s32 0, %v4824_v26  ;;  %v154_v31 = vsub.s32 1, %v4824_v26  ;;  %v219_v43 = vsel %vm118_vm0, %v159_v38, 0  ;;  %v395_v44 = vsel %vm118_vm0, %v163_v39, 0  ;;  %v165_v46 = vld [vmem:[%s5468_s2 + $0x1c] sm:$0xf] }
  0x5f   :  { %4000 = vmatprep.mubr.msk.bf16.mxu0 %vm4677_vm1, %v4676_v16  ;;  %4018 = vmatprep.mubr.msk.bf16.mxu1 %vm4677_vm1, %v4676_v16  ;;  %v263_v47 = vsel %vm118_vm0, %v160_v45, 0  ;;  %v483_v48 = vsel %vm118_vm0, %v165_v46, 0  ;;  %v162_v49 = vld [vmem:[%s5468_s2 + $0x10] sm:$0xf]  ;;  %v167_v50 = vld [vmem:[%s5468_s2 + $0x24] sm:$0xf] }
  0x60   :  { %123 = vadd.xlane.f32.xlu0 %v122_v3  ;;  %v149_v30 = vrot.slane %v4827_v28, %v148_v27  ;;  %v155_v34 = vrot.slane %v4827_v28, %v154_v31  ;;  %v351_v51 = vsel %vm118_vm0, %v162_v49, 0  ;;  %v571_v52 = vsel %vm118_vm0, %v167_v50, 0  ;;  %v164_v53 = vld [vmem:[%s5468_s2 + $0x18] sm:$0xf]  ;;  %v169_v54 = vld [vmem:[%s5468_s2 + $0x2c] sm:$0xf] }
  0x61   :  { %v439_v55 = vsel %vm118_vm0, %v164_v53, 0  ;;  %v659_v56 = vsel %vm118_vm0, %v169_v54, 0  ;;  %v166_v57 = vld [vmem:[%s5468_s2 + $0x20] sm:$0xf]  ;;  %v168_v59 = vld [vmem:[%s5468_s2 + $0x28] sm:$0xf] }
  0x62   :  { %v527_v58 = vsel %vm118_vm0, %v166_v57, 0  ;;  %v615_v60 = vsel %vm118_vm0, %v168_v59, 0  ;;  %vm726_vm2 = vcmask 64512   ;;  %vm1194_vm3 = vcmask 1043456  }
  0x63   :  { %vm2820_vm4 = vcmask 130048  }
  0xe9   :  { %v121_v4 = vpop.xlane.xlu0 %120 }
  0xea   :  { %v126_v5 = vmul.f32 0.03125, %v121_v4 }
  0xec   :  { %v128_v6 = vsub.f32 %v102_v0, %v126_v5 }
  0xed   :  { %v124_v7 = vpop.xlane.xlu0 %123 }
  0xee   :  { %v127_v8 = vmul.f32 0.03125, %v124_v7  ;;  %v130_v9 = vmul.f32 %v128_v6, %v128_v6 }
  0xf0   :  { %v129_v10 = vsub.f32 %v103_v1, %v127_v8  ;;  %v132_v11 = vsel %vm118_vm0, %v130_v9, 0.0 }
  0xf1   :  { %133 = vadd.xlane.f32.xlu1 %v132_v11 }
  0xf2   :  { %v131_v12 = vmul.f32 %v129_v10, %v129_v10 }
  0xf4   :  { %v135_v13 = vsel %vm118_vm0, %v131_v12, 0.0 }
  0xf5   :  { %136 = vadd.xlane.f32.xlu1 %v135_v13 }
 0x17e   :  { %v134_v19 = vpop.xlane.xlu1 %133 }
 0x17f   :  { %v138_v20 = vmul.f32 0.03125, %v134_v19 }
 0x181   :  { %v140_v21 = vadd.f32 1e-05, %v138_v20 }
 0x182   :  { %v137_v23 = vpop.xlane.xlu1 %136 }
 0x183   :  { %4440 = vrsqrt.f32 %v140_v21  ;;  %v139_v24 = vmul.f32 0.03125, %v137_v23 }
 0x185   :  { %v141_v25 = vadd.f32 1e-05, %v139_v24 }
 0x187   :  { %4442 = vrsqrt.f32 %v141_v25 }
 0x18d   :  { %v4441_v29 = vpop.eup %4440 }
 0x18e   :  { %v144_v32 = vmul.f32 %v4441_v29, %v128_v6 }
 0x190   :  { %v150_v35 = vmul.f32 %v149_v30, %v144_v32 }
 0x191   :  { %v4443_v33 = vpop.eup %4442 }
 0x192   :  { %v145_v36 = vmul.f32 %v4443_v33, %v129_v10  ;;  %v156_v40 = vadd.f32 %v155_v34, %v150_v35 }
 0x194   :  { %v151_v37 = vmul.f32 %v149_v30, %v145_v36 }
 0x196   :  { %v157_v41 = vadd.f32 %v155_v34, %v151_v37 }
 0x198   :  { %v170_v42 = vpack.c.bf16 %v157_v41, %v156_v40 }
 0x19a   :  { %4001 = vmatmul.mubr.msk.bf16.vlgmr.msra.gmra.mrb[0].mxu0 %vm118_vm0, %v170_v42  ;;  %4019 = vmatmul.mubr.msk.bf16.vlgmr.msra.gmra.mrb[0].mxu1 %vm118_vm0, %v170_v42 }
 0x19b   :  { %4005 = vmatpush3.bf16.xpose.msra.mxu0 %v219_v43  ;;  %4029 = vmatpush3.bf16.xpose.msra.mxu1 %v395_v44 }
 0x19c   :  { %4006 = vmatprep.mubr.msk.bf16.mxu0 %vm4677_vm1, %v4676_v16  ;;  %4030 = vmatprep.mubr.msk.bf16.mxu1 %vm4677_vm1, %v4676_v16 }
 0x19d   :  { %4010 = vmatprep.subr.bf16.mxu0 %v4676_v16  ;;  %4040 = vmatprep.subr.bf16.mxu1 %v4676_v16 }
 0x1a2   :  { %4007 = vmatmul.mubr.msk.bf16.vlgmr.msra.gmra.mrb[4].mxu0 %vm118_vm0, %v170_v42  ;;  %4031 = vmatmul.mubr.msk.bf16.vlgmr.msra.gmra.mrb[4].mxu1 %vm118_vm0, %v170_v42 }
 0x1a3   :  { %4011 = vmatpush3.bf16.xpose.msra.mxu0 %v263_v47  ;;  %4041 = vmatpush3.bf16.xpose.msra.mxu1 %v483_v48 }
 0x1a4   :  { %4012 = vmatprep.mubr.msk.bf16.mxu0 %vm4677_vm1, %v4676_v16  ;;  %4042 = vmatprep.mubr.msk.bf16.mxu1 %vm4677_vm1, %v4676_v16 }
 0x1a5   :  { %4022 = vmatprep.subr.bf16.mxu0 %v4676_v16  ;;  %4052 = vmatprep.subr.bf16.mxu1 %v4676_v16 }
 0x1aa   :  { %4013 = vmatmul.mubr.msk.bf16.vlgmr.msra.gmra.mrb[8].mxu0 %vm118_vm0, %v170_v42  ;;  %4043 = vmatmul.mubr.msk.bf16.vlgmr.msra.gmra.mrb[8].mxu1 %vm118_vm0, %v170_v42 }
 0x1ab   :  { %4023 = vmatpush3.bf16.xpose.msra.mxu0 %v351_v51  ;;  %4053 = vmatpush3.bf16.xpose.msra.mxu1 %v571_v52 }
 0x1ac   :  { %4024 = vmatprep.mubr.msk.bf16.mxu0 %vm4677_vm1, %v4676_v16  ;;  %4054 = vmatprep.mubr.msk.bf16.mxu1 %vm4677_vm1, %v4676_v16 }
 0x1ad   :  { %4034 = vmatprep.subr.bf16.mxu0 %v4676_v16  ;;  %4064 = vmatprep.subr.bf16.mxu1 %v4676_v16 }
 0x1b2   :  { %4025 = vmatmul.mubr.msk.bf16.vlgmr.msra.gmra.mrb[12].mxu0 %vm118_vm0, %v170_v42  ;;  %4055 = vmatmul.mubr.msk.bf16.vlgmr.msra.gmra.mrb[12].mxu1 %vm118_vm0, %v170_v42 }
 0x1b3   :  { %4035 = vmatpush3.bf16.xpose.msra.mxu0 %v439_v55  ;;  %4065 = vmatpush3.bf16.xpose.msra.mxu1 %v659_v56 }
 0x1b4   :  { %4036 = vmatprep.mubr.msk.bf16.mxu0 %vm4677_vm1, %v4676_v16  ;;  %4066 = vmatprep.mubr.msk.bf16.mxu1 %vm4677_vm1, %v4676_v16 }
 0x1b5   :  { %4046 = vmatprep.subr.bf16.mxu0 %v4676_v16  ;;  %4076 = vmatprep.subr.bf16.mxu1 %v4676_v16 }
 0x1ba   :  { %4037 = vmatmul.mubr.msk.bf16.vlgmr.msra.gmra.mrb[16].mxu0 %vm118_vm0, %v170_v42  ;;  %4067 = vmatmul.mubr.msk.bf16.vlgmr.msra.gmra.mrb[16].mxu1 %vm118_vm0, %v170_v42 }
 0x1bb   :  { %4047 = vmatpush3.bf16.xpose.msra.mxu0 %v527_v58  ;;  %4048 = vmatprep.mubr.msk.bf16.mxu0 %vm4677_vm1, %v4676_v16 }
 0x1bc   :  { %4058 = vmatprep.subr.bf16.mxu0 %v4676_v16  ;;  %4078 = vmatprep.mubr.msk.bf16.mxu1 %vm4677_vm1, %v4676_v16 }
 0x1c2   :  { %4049 = vmatmul.mubr.msk.bf16.vlgmr.msra.gmra.mrb[20].mxu0 %vm118_vm0, %v170_v42 }
 0x1c3   :  { %4059 = vmatpush3.bf16.xpose.msra.mxu0 %v615_v60  ;;  %4060 = vmatprep.mubr.msk.bf16.mxu0 %vm4677_vm1, %v4676_v16 }
 0x1c4   :  { %4070 = vmatprep.subr.bf16.mxu0 %v4676_v16 }
 0x1ca   :  { %4061 = vmatmul.mubr.msk.bf16.vlgmr.msra.gmra.mrb[24].mxu0 %vm118_vm0, %v170_v42 }
 0x1cb   :  { %4072 = vmatprep.mubr.msk.bf16.mxu0 %vm4677_vm1, %v4676_v16 }
 0x26d   :  { %v211_v61 = vpop.f32.mrb[0].mxu0  ;;  %v4920_v62 = vpop.f32.mrb[0].mxu1 }
 0x26e   :  { %v4002_v63 = vpop.f32.mrb[1].mxu0  ;;  %v4020_v0 = vpop.f32.mrb[1].mxu1  ;;  %v702_v40 = vpack.c.bf16 %v211_v61, %v211_v61 }
 0x26f   :  { %v214_v1 = vpop.f32.mrb[2].mxu0  ;;  %v4922_v2 = vpop.f32.mrb[2].mxu1 }
 0x270   :  { %v4003_v3 = vpop.f32.mrb[3].mxu0  ;;  %v4021_v4 = vpop.f32.mrb[3].mxu1  ;;  %v703_v46 = vpack.c.bf16 %v214_v1, %v214_v1 }
 0x275   :  { %v4924_v5 = vpop.f32.mrb[4].mxu0  ;;  %v431_v6 = vpop.f32.mrb[4].mxu1 }
 0x276   :  { %v4008_v7 = vpop.f32.mrb[5].mxu0  ;;  %v4032_v8 = vpop.f32.mrb[5].mxu1  ;;  %v712_v37 = vpack.c.bf16 %v431_v6, %v431_v6  ;;  %v704_v53 = vpack.c.bf16 %v4924_v5, %v4924_v5 }
 0x277   :  { %v4926_v9 = vpop.f32.mrb[6].mxu0  ;;  %v434_v10 = vpop.f32.mrb[6].mxu1 }
 0x278   :  { %v4009_v11 = vpop.f32.mrb[7].mxu0  ;;  %v4033_v12 = vpop.f32.mrb[7].mxu1  ;;  %v713_v41 = vpack.c.bf16 %v434_v10, %v434_v10  ;;  %v823_v47 = vsel %vm726_vm2, %v712_v37, 0  ;;  %v705_v57 = vpack.c.bf16 %v4926_v9, %v4926_v9  ;;  %v708_v10 = vpack.c.bf16 %v4920_v62, %v4920_v62 }
 0x279   :  { %v709_v12 = vpack.c.bf16 %v4922_v2, %v4922_v2 }
 0x27a   :  { %v869_v50 = vsel %vm726_vm2, %v713_v41, 0 }
 0x27d   :  { %v4928_v13 = vpop.f32.mrb[8].mxu0  ;;  %v4930_v14 = vpop.f32.mrb[8].mxu1 }
 0x27e   :  { %v4014_v15 = vpop.f32.mrb[9].mxu0  ;;  %v4044_v17 = vpop.f32.mrb[9].mxu1  ;;  %v716_v61 = vpack.c.bf16 %v4930_v14, %v4930_v14  ;;  %v706_v0 = vpack.c.bf16 %v4928_v13, %v4928_v13 }
 0x27f   :  { %v4932_v18 = vpop.f32.mrb[10].mxu0  ;;  %v4934_v19 = vpop.f32.mrb[10].mxu1 }
 0x280   :  { %v4015_v20 = vpop.f32.mrb[11].mxu0  ;;  %v4045_v21 = vpop.f32.mrb[11].mxu1  ;;  %v717_v1 = vpack.c.bf16 %v4934_v19, %v4934_v19  ;;  %v1007_v5 = vsel %vm726_vm2, %v716_v61, 0  ;;  %v707_v6 = vpack.c.bf16 %v4932_v18, %v4932_v18 }
 0x282   :  { %v1053_v8 = vsel %vm726_vm2, %v717_v1, 0 }
 0x285   :  { %v387_v22 = vpop.f32.mrb[12].mxu0  ;;  %v4936_v23 = vpop.f32.mrb[12].mxu1 }
 0x286   :  { %v710_v24 = vpack.c.bf16 %v387_v22, %v387_v22  ;;  %v4026_v25 = vpop.f32.mrb[13].mxu0  ;;  %v4056_v29 = vpop.f32.mrb[13].mxu1 }
 0x287   :  { %v390_v30 = vpop.f32.mrb[14].mxu0  ;;  %v4938_v31 = vpop.f32.mrb[14].mxu1 }
 0x288   :  { %v731_v32 = vsel %vm726_vm2, %v710_v24, 0  ;;  %v711_v33 = vpack.c.bf16 %v390_v30, %v390_v30  ;;  %v4027_v34 = vpop.f32.mrb[15].mxu0  ;;  %v4057_v35 = vpop.f32.mrb[15].mxu1 }
 0x289   :  { %4071 = vmatpush3.bf16.xpose.msra.mxu0 %v731_v32 }
 0x28a   :  { %v777_v36 = vsel %vm726_vm2, %v711_v33, 0  ;;  %4082 = vmatprep.subr.bf16.mxu0 %v4676_v16 }
 0x28b   :  { %4077 = vmatpush3.bf16.xpose.msra.mxu1 %v777_v36 }
 0x28c   :  { %4088 = vmatprep.subr.bf16.mxu1 %v4676_v16 }
 0x28d   :  { %v475_v38 = vpop.f32.mrb[16].mxu0  ;;  %v4944_v39 = vpop.f32.mrb[16].mxu1 }
 0x28e   :  { %v4038_v42 = vpop.f32.mrb[17].mxu0  ;;  %v4068_v43 = vpop.f32.mrb[17].mxu1  ;;  %v714_v51 = vpack.c.bf16 %v475_v38, %v475_v38 }
 0x28f   :  { %v478_v44 = vpop.f32.mrb[18].mxu0  ;;  %v4946_v45 = vpop.f32.mrb[18].mxu1 }
 0x290   :  { %v4039_v48 = vpop.f32.mrb[19].mxu0  ;;  %v4069_v49 = vpop.f32.mrb[19].mxu1  ;;  %4073 = vmatmul.mubr.msk.bf16.vlgmr.msra.gmra.mrb[28].mxu0 %vm726_vm2, %v702_v40  ;;  %v715_v54 = vpack.c.bf16 %v478_v44, %v478_v44  ;;  %v915_v58 = vsel %vm726_vm2, %v714_v51, 0 }
 0x291   :  { %4083 = vmatpush3.bf16.xpose.msra.mxu0 %v823_v47  ;;  %4084 = vmatprep.mubr.msk.bf16.mxu0 %vm4677_vm1, %v4676_v16 }
 0x292   :  { %4079 = vmatmul.mubr.msk.bf16.vlgmr.msra.gmra.mrb[20].mxu1 %vm726_vm2, %v703_v46  ;;  %4094 = vmatprep.subr.bf16.mxu0 %v4676_v16  ;;  %v961_v60 = vsel %vm726_vm2, %v715_v54, 0 }
 0x293   :  { %4089 = vmatpush3.bf16.xpose.msra.mxu1 %v869_v50  ;;  %4090 = vmatprep.mubr.msk.bf16.mxu1 %vm4677_vm1, %v4676_v16 }
 0x294   :  { %4100 = vmatprep.subr.bf16.mxu1 %v4676_v16 }
 0x295   :  { %v563_v52 = vpop.f32.mrb[20].mxu0 }
 0x296   :  { %v4050_v55 = vpop.f32.mrb[21].mxu0  ;;  %v718_v9 = vpack.c.bf16 %v563_v52, %v563_v52 }
 0x297   :  { %v566_v56 = vpop.f32.mrb[22].mxu0 }
 0x298   :  { %v4051_v59 = vpop.f32.mrb[23].mxu0  ;;  %4085 = vmatmul.mubr.msk.bf16.vlgmr.msra.gmra.mrb[32].mxu0 %vm726_vm2, %v704_v53  ;;  %v719_v11 = vpack.c.bf16 %v566_v56, %v566_v56  ;;  %v1196_v13 = vsel %vm1194_vm3, %v718_v9, 0 }
 0x299   :  { %4095 = vmatpush3.bf16.xpose.msra.mxu0 %v915_v58  ;;  %4096 = vmatprep.mubr.msk.bf16.mxu0 %vm4677_vm1, %v4676_v16 }
 0x29a   :  { %4091 = vmatmul.mubr.msk.bf16.vlgmr.msra.gmra.mrb[24].mxu1 %vm726_vm2, %v705_v57  ;;  %4106 = vmatprep.subr.bf16.mxu0 %v4676_v16  ;;  %v1242_v14 = vsel %vm1194_vm3, %v719_v11, 0 }
 0x29b   :  { %4101 = vmatpush3.bf16.xpose.msra.mxu1 %v961_v60  ;;  %4102 = vmatprep.mubr.msk.bf16.mxu1 %vm4677_vm1, %v4676_v16 }
 0x29c   :  { %4112 = vmatprep.subr.bf16.mxu1 %v4676_v16 }
 0x29d   :  { %v4974_v63 = vpop.f32.mrb[24].mxu0 }
 0x29e   :  { %v4062_v3 = vpop.f32.mrb[25].mxu0 }
 0x29f   :  { %v4980_v4 = vpop.f32.mrb[26].mxu0 }
 0x2a0   :  { %v4063_v7 = vpop.f32.mrb[27].mxu0  ;;  %4097 = vmatmul.mubr.msk.bf16.vlgmr.msra.gmra.mrb[36].mxu0 %vm726_vm2, %v706_v0 }
 0x2a1   :  { %4107 = vmatpush3.bf16.xpose.msra.mxu0 %v1007_v5  ;;  %4108 = vmatprep.mubr.msk.bf16.mxu0 %vm4677_vm1, %v4676_v16 }
 0x2a2   :  { %4103 = vmatmul.mubr.msk.bf16.vlgmr.msra.gmra.mrb[28].mxu1 %vm726_vm2, %v707_v6  ;;  %4118 = vmatprep.subr.bf16.mxu0 %v4676_v16 }
 0x2a3   :  { %4113 = vmatpush3.bf16.xpose.msra.mxu1 %v1053_v8  ;;  %4114 = vmatprep.mubr.msk.bf16.mxu1 %vm4677_vm1, %v4676_v16 }
 0x2a4   :  { %4124 = vmatprep.subr.bf16.mxu1 %v4676_v16 }
 0x2a8   :  { %4109 = vmatmul.mubr.msk.bf16.vlgmr.msra.gmra.mrb[40].mxu0 %vm726_vm2, %v708_v10 }
 0x2a9   :  { %4119 = vmatpush3.bf16.msra.mxu0 %v1196_v13  ;;  %4120 = vmatprep.mubr.msk.bf16.mxu0 %vm4677_vm1, %v4676_v16 }
 0x2aa   :  { %4115 = vmatmul.mubr.msk.bf16.vlgmr.msra.gmra.mrb[32].mxu1 %vm726_vm2, %v709_v12  ;;  %4130 = vmatprep.subr.bf16.mxu0 %v4676_v16 }
 0x2ab   :  { %4125 = vmatpush3.bf16.msra.mxu1 %v1242_v14  ;;  %4126 = vmatprep.mubr.msk.bf16.mxu1 %vm4677_vm1, %v4676_v16 }
 0x2ac   :  { %4136 = vmatprep.subr.bf16.mxu1 %v4676_v16 }
 0x363   :  { %v767_v62 = vpop.f32.mrb[28].mxu0 }
 0x364   :  { %v4074_v2 = vpop.f32.mrb[29].mxu0  ;;  %v1095_v15 = vsel %vm726_vm2, %v767_v62, -inf }
 0x365   :  { %v813_v17 = vpop.f32.mrb[20].mxu1  ;;  %1096 = vmax.xlane.f32.xlu0 %v1095_v15  ;;  %v770_v18 = vpop.f32.mrb[30].mxu0 }
 0x366   :  { %v4075_v19 = vpop.f32.mrb[31].mxu0  ;;  %v4080_v20 = vpop.f32.mrb[21].mxu1  ;;  %v1098_v21 = vsel %vm726_vm2, %v813_v17, -inf }
 0x367   :  { %1099 = vmax.xlane.f32.xlu1 %v1098_v21  ;;  %v816_v22 = vpop.f32.mrb[22].mxu1 }
 0x368   :  { %v4081_v24 = vpop.f32.mrb[23].mxu1 }
 0x36b   :  { %v859_v25 = vpop.f32.mrb[32].mxu0 }
 0x36c   :  { %v4086_v29 = vpop.f32.mrb[33].mxu0  ;;  %v1101_v30 = vsel %vm726_vm2, %v859_v25, -inf }
 0x36d   :  { %v905_v32 = vpop.f32.mrb[24].mxu1  ;;  %1102 = vmax.xlane.f32.xlu0 %v1101_v30  ;;  %v862_v33 = vpop.f32.mrb[34].mxu0 }
 0x36e   :  { %v4087_v34 = vpop.f32.mrb[35].mxu0  ;;  %v4092_v35 = vpop.f32.mrb[25].mxu1  ;;  %v1104_v36 = vsel %vm726_vm2, %v905_v32, -inf }
 0x36f   :  { %1105 = vmax.xlane.f32.xlu1 %v1104_v36  ;;  %v908_v37 = vpop.f32.mrb[26].mxu1 }
 0x370   :  { %v4093_v38 = vpop.f32.mrb[27].mxu1 }
 0x373   :  { %v951_v40 = vpop.f32.mrb[36].mxu0 }
 0x374   :  { %v4098_v41 = vpop.f32.mrb[37].mxu0  ;;  %v1107_v42 = vsel %vm726_vm2, %v951_v40, -inf }
 0x375   :  { %v997_v43 = vpop.f32.mrb[28].mxu1  ;;  %1108 = vmax.xlane.f32.xlu0 %v1107_v42  ;;  %v954_v44 = vpop.f32.mrb[38].mxu0 }
 0x376   :  { %v4099_v46 = vpop.f32.mrb[39].mxu0  ;;  %v4104_v47 = vpop.f32.mrb[29].mxu1  ;;  %v1110_v48 = vsel %vm726_vm2, %v997_v43, -inf }
 0x377   :  { %1111 = vmax.xlane.f32.xlu1 %v1110_v48  ;;  %v1000_v49 = vpop.f32.mrb[30].mxu1 }
 0x378   :  { %v4105_v50 = vpop.f32.mrb[31].mxu1 }
 0x37b   :  { %v1043_v51 = vpop.f32.mrb[40].mxu0 }
 0x37c   :  { %v4110_v52 = vpop.f32.mrb[41].mxu0  ;;  %v1113_v53 = vsel %vm726_vm2, %v1043_v51, -inf }
 0x37d   :  { %v1089_v54 = vpop.f32.mrb[32].mxu1  ;;  %1114 = vmax.xlane.f32.xlu0 %v1113_v53  ;;  %v1046_v55 = vpop.f32.mrb[42].mxu0  ;;  %v720_v52 = vpack.c.bf16 %v4936_v23, %v4936_v23 }
 0x37e   :  { %v4111_v56 = vpop.f32.mrb[43].mxu0  ;;  %v4116_v57 = vpop.f32.mrb[33].mxu1  ;;  %v1116_v58 = vsel %vm726_vm2, %v1089_v54, -inf  ;;  %v721_v55 = vpack.c.bf16 %v4938_v31, %v4938_v31 }
 0x37f   :  { %1117 = vmax.xlane.f32.xlu1 %v1116_v58  ;;  %v1092_v59 = vpop.f32.mrb[34].mxu1  ;;  %v1288_v58 = vsel %vm1194_vm3, %v720_v52, 0 }
 0x380   :  { %v4117_v60 = vpop.f32.mrb[35].mxu1  ;;  %v1334_v23 = vsel %vm1194_vm3, %v721_v55, 0 }
 0x3f2   :  { %v1097_v61 = vpop.xlane.xlu0 %1096 }
 0x3f3   :  { %v1119_v0 = vsub.f32 %v767_v62, %v1097_v61 }
 0x3f4   :  { %v1100_v1 = vpop.xlane.xlu1 %1099 }
 0x3f5   :  { %v1127_v3 = vmul.f32 1.442695, %v1119_v0  ;;  %v1120_v5 = vsub.f32 %v813_v17, %v1100_v1  ;;  %v722_v0 = vpack.c.bf16 %v4974_v63, %v4974_v63 }
 0x3f7   :  { %4444 = vpow2.f32 %v1127_v3  ;;  %v1129_v6 = vmul.f32 1.442695, %v1120_v5  ;;  %v723_v5 = vpack.c.bf16 %v4980_v4, %v4980_v4 }
 0x3f9   :  { %4446 = vpow2.f32 %v1129_v6  ;;  %v1426_v63 = vsel %vm1194_vm3, %v723_v5, 0 }
 0x3fa   :  { %v1103_v7 = vpop.xlane.xlu0 %1102 }
 0x3fb   :  { %v1121_v8 = vsub.f32 %v859_v25, %v1103_v7 }
 0x3fc   :  { %v1106_v9 = vpop.xlane.xlu1 %1105 }
 0x3fd   :  { %v1131_v10 = vmul.f32 1.442695, %v1121_v8  ;;  %v1122_v11 = vsub.f32 %v905_v32, %v1106_v9  ;;  %v1380_v8 = vsel %vm1194_vm3, %v722_v0, 0 }
 0x3ff   :  { %4448 = vpow2.f32 %v1131_v10  ;;  %v1133_v12 = vmul.f32 1.442695, %v1122_v11 }
 0x401   :  { %v4445_v13 = vpop.eup %4444  ;;  %4450 = vpow2.f32 %v1133_v12  ;;  %v724_v12 = vpack.c.bf16 %v4944_v39, %v4944_v39 }
 0x402   :  { %v1109_v14 = vpop.xlane.xlu0 %1108  ;;  %v1143_v2 = vsel %vm726_vm2, %v4445_v13, 0.0 }
 0x403   :  { %v4447_v15 = vpop.eup %4446  ;;  %v1123_v62 = vsub.f32 %v951_v40, %v1109_v14  ;;  %1144 = vadd.xlane.f32.xlu0 %v1143_v2  ;;  %v725_v2 = vpack.c.bf16 %v4946_v45, %v4946_v45 }
 0x404   :  { %v1112_v18 = vpop.xlane.xlu1 %1111  ;;  %v1146_v17 = vsel %vm726_vm2, %v4447_v15, 0.0 }
 0x405   :  { %v1135_v19 = vmul.f32 1.442695, %v1123_v62  ;;  %v1124_v20 = vsub.f32 %v997_v43, %v1112_v18  ;;  %1147 = vadd.xlane.f32.xlu1 %v1146_v17  ;;  %v1472_v18 = vsel %vm1194_vm3, %v724_v12, 0  ;;  %v1518_v39 = vsel %vm1194_vm3, %v725_v2, 0 }
 0x407   :  { %4452 = vpow2.f32 %v1135_v19  ;;  %v1137_v21 = vmul.f32 1.442695, %v1124_v20 }
 0x409   :  { %v4449_v22 = vpop.eup %4448  ;;  %4454 = vpow2.f32 %v1137_v21 }
 0x40a   :  { %v1115_v24 = vpop.xlane.xlu0 %1114  ;;  %v1149_v25 = vsel %vm726_vm2, %v4449_v22, 0.0 }
 0x40b   :  { %v4451_v29 = vpop.eup %4450  ;;  %v1125_v30 = vsub.f32 %v1043_v51, %v1115_v24  ;;  %1150 = vadd.xlane.f32.xlu0 %v1149_v25  ;;  %v110_v25 = vld [vmem:[#allocation7] sm:$0xf] }
 0x40c   :  { %v1118_v32 = vpop.xlane.xlu1 %1117  ;;  %v1152_v33 = vsel %vm726_vm2, %v4451_v29, 0.0 }
 0x40d   :  { %v1139_v34 = vmul.f32 1.442695, %v1125_v30  ;;  %v1126_v35 = vsub.f32 %v1089_v54, %v1118_v32  ;;  %1153 = vadd.xlane.f32.xlu1 %v1152_v33  ;;  %v111_v30 = vld [vmem:[#allocation7 + $0x4] sm:$0xf] }
 0x40e   :  { %v1615_v32 = vsel %vm1194_vm3, %v111_v30, 0 }
 0x40f   :  { %4456 = vpow2.f32 %v1139_v34  ;;  %v1141_v36 = vmul.f32 1.442695, %v1126_v35  ;;  %v112_v34 = vld [vmem:[#allocation7 + $0x8] sm:$0xf] }
 0x411   :  { %v5020_v37 = vpop.eup %4452  ;;  %4458 = vpow2.f32 %v1141_v36 }
 0x412   :  { %v1155_v38 = vsel %vm726_vm2, %v5020_v37, 0.0 }
 0x413   :  { %v5024_v40 = vpop.eup %4454  ;;  %1156 = vadd.xlane.f32.xlu0 %v1155_v38 }
 0x414   :  { %v1158_v41 = vsel %vm726_vm2, %v5024_v40, 0.0 }
 0x415   :  { %1159 = vadd.xlane.f32.xlu1 %v1158_v41 }
 0x419   :  { %v5028_v42 = vpop.eup %4456 }
 0x41a   :  { %v1161_v43 = vsel %vm726_vm2, %v5028_v42, 0.0 }
 0x41b   :  { %v5032_v44 = vpop.eup %4458  ;;  %1162 = vadd.xlane.f32.xlu0 %v1161_v43 }
 0x41c   :  { %v1164_v46 = vsel %vm726_vm2, %v5032_v44, 0.0 }
 0x41d   :  { %1165 = vadd.xlane.f32.xlu1 %v1164_v46 }
 0x490   :  { %v1145_v47 = vpop.xlane.xlu0 %1144 }
 0x491   :  { %4460 = vrcp.f32 %v1145_v47  ;;  %v113_v47 = vld [vmem:[#allocation7 + $0xc] sm:$0xf] }
 0x492   :  { %v1148_v48 = vpop.xlane.xlu1 %1147 }
 0x493   :  { %4462 = vrcp.f32 %v1148_v48 }
 0x498   :  { %v1151_v49 = vpop.xlane.xlu0 %1150 }
 0x499   :  { %4464 = vrcp.f32 %v1151_v49 }
 0x49a   :  { %v1154_v50 = vpop.xlane.xlu1 %1153 }
 0x49b   :  { %v4461_v51 = vpop.eup %4460  ;;  %4466 = vrcp.f32 %v1154_v50 }
 0x49c   :  { %v1175_v53 = vmul.f32 %v4461_v51, %v4445_v13 }
 0x49d   :  { %v4463_v54 = vpop.eup %4462 }
 0x49e   :  { %v1176_v56 = vmul.f32 %v4463_v54, %v4447_v15  ;;  %v1183_v57 = vpack.c.bf16 %v1175_v53, %v1175_v53  ;;  %v1709_v54 = vsel %vm1194_vm3, %v113_v47, 0 }
 0x4a0   :  { %4121 = vmatmul.mubr.msk.bf16.vlgmr.msra.gmra.mrb[44].mxu0 %vm726_vm2, %v1183_v57  ;;  %v1157_v59 = vpop.xlane.xlu0 %1156  ;;  %v1184_v60 = vpack.c.bf16 %v1176_v56, %v1176_v56 }
 0x4a1   :  { %4131 = vmatpush3.bf16.msra.mxu0 %v1288_v58  ;;  %4468 = vrcp.f32 %v1157_v59  ;;  %4132 = vmatprep.mubr.msk.bf16.mxu0 %vm4677_vm1, %v4676_v16 }
 0x4a2   :  { %v1160_v61 = vpop.xlane.xlu1 %1159  ;;  %4127 = vmatmul.mubr.msk.bf16.vlgmr.msra.gmra.mrb[36].mxu1 %vm726_vm2, %v1184_v60  ;;  %4142 = vmatprep.subr.bf16.mxu0 %v4676_v16 }
 0x4a3   :  { %v4465_v31 = vpop.eup %4464  ;;  %4470 = vrcp.f32 %v1160_v61  ;;  %4137 = vmatpush3.bf16.msra.mxu1 %v1334_v23  ;;  %4138 = vmatprep.mubr.msk.bf16.mxu1 %vm4677_vm1, %v4676_v16 }
 0x4a4   :  { %v1177_v1 = vmul.f32 %v4465_v31, %v4449_v22  ;;  %4148 = vmatprep.subr.bf16.mxu1 %v4676_v16 }
 0x4a5   :  { %v4467_v3 = vpop.eup %4466 }
 0x4a6   :  { %v1178_v6 = vmul.f32 %v4467_v3, %v4451_v29  ;;  %v1185_v7 = vpack.c.bf16 %v1177_v1, %v1177_v1  ;;  %v1568_v29 = vsel %vm1194_vm3, %v110_v25, 0 }
 0x4a8   :  { %4133 = vmatmul.mubr.msk.bf16.vlgmr.msra.gmra.mrb[48].mxu0 %vm726_vm2, %v1185_v7  ;;  %v1163_v9 = vpop.xlane.xlu0 %1162  ;;  %v1186_v10 = vpack.c.bf16 %v1178_v6, %v1178_v6 }
 0x4a9   :  { %4143 = vmatpush3.bf16.msra.mxu0 %v1380_v8  ;;  %4472 = vrcp.f32 %v1163_v9  ;;  %4144 = vmatprep.mubr.msk.bf16.mxu0 %vm4677_vm1, %v4676_v16 }
 0x4aa   :  { %v1166_v11 = vpop.xlane.xlu1 %1165  ;;  %4139 = vmatmul.mubr.msk.bf16.vlgmr.msra.gmra.mrb[40].mxu1 %vm726_vm2, %v1186_v10  ;;  %4154 = vmatprep.subr.bf16.mxu0 %v4676_v16 }
 0x4ab   :  { %v4469_v4 = vpop.eup %4468  ;;  %4474 = vrcp.f32 %v1166_v11  ;;  %4149 = vmatpush3.bf16.msra.mxu1 %v1426_v63  ;;  %4150 = vmatprep.mubr.msk.bf16.mxu1 %vm4677_vm1, %v4676_v16 }
 0x4ac   :  { %v1179_v13 = vmul.f32 %v4469_v4, %v5020_v37  ;;  %4160 = vmatprep.subr.bf16.mxu1 %v4676_v16 }
 0x4ad   :  { %v4471_v14 = vpop.eup %4470 }
 0x4ae   :  { %v1180_v15 = vmul.f32 %v4471_v14, %v5024_v40  ;;  %v1187_v62 = vpack.c.bf16 %v1179_v13, %v1179_v13 }
 0x4b0   :  { %4145 = vmatmul.mubr.msk.bf16.vlgmr.msra.gmra.mrb[52].mxu0 %vm726_vm2, %v1187_v62  ;;  %v1188_v17 = vpack.c.bf16 %v1180_v15, %v1180_v15 }
 0x4b1   :  { %4155 = vmatpush3.bf16.msra.mxu0 %v1472_v18  ;;  %4156 = vmatprep.mubr.msk.bf16.mxu0 %vm4677_vm1, %v4676_v16 }
 0x4b2   :  { %4151 = vmatmul.mubr.msk.bf16.vlgmr.msra.gmra.mrb[44].mxu1 %vm726_vm2, %v1188_v17  ;;  %4166 = vmatprep.subr.bf16.mxu0 %v4676_v16 }
 0x4b3   :  { %v4473_v19 = vpop.eup %4472  ;;  %4161 = vmatpush3.bf16.msra.mxu1 %v1518_v39  ;;  %4162 = vmatprep.mubr.msk.bf16.mxu1 %vm4677_vm1, %v4676_v16 }
 0x4b4   :  { %v1181_v45 = vmul.f32 %v4473_v19, %v5028_v42  ;;  %4172 = vmatprep.subr.bf16.mxu1 %v4676_v16  ;;  %v1662_v42 = vsel %vm1194_vm3, %v112_v34, 0 }
 0x4b5   :  { %v4475_v20 = vpop.eup %4474 }
 0x4b6   :  { %v1182_v21 = vmul.f32 %v4475_v20, %v5032_v44  ;;  %v1189_v22 = vpack.c.bf16 %v1181_v45, %v1181_v45 }
 0x4b8   :  { %4157 = vmatmul.mubr.msk.bf16.vlgmr.msra.gmra.mrb[56].mxu0 %vm726_vm2, %v1189_v22  ;;  %v1190_v24 = vpack.c.bf16 %v1182_v21, %v1182_v21 }
 0x4b9   :  { %4168 = vmatprep.mubr.msk.bf16.mxu0 %vm4677_vm1, %v4676_v16  ;;  %4167 = vmatpush3.bf16.msra.mxu0 %v1568_v29 }
 0x4ba   :  { %4163 = vmatmul.mubr.msk.bf16.vlgmr.msra.gmra.mrb[48].mxu1 %vm726_vm2, %v1190_v24  ;;  %4178 = vmatprep.subr.bf16.mxu0 %v4676_v16 }
 0x4bb   :  { %4174 = vmatprep.mubr.msk.bf16.mxu1 %vm4677_vm1, %v4676_v16  ;;  %4173 = vmatpush3.bf16.msra.mxu1 %v1615_v32 }
 0x4bc   :  { %4184 = vmatprep.subr.bf16.mxu1 %v4676_v16 }
 0x573   :  { %v1232_v33 = vpop.f32.mrb[44].mxu0 }
 0x574   :  { %v4122_v35 = vpop.f32.mrb[45].mxu0 }
 0x575   :  { %v1235_v36 = vpop.f32.mrb[46].mxu0  ;;  %v1278_v37 = vpop.f32.mrb[36].mxu1  ;;  %v1768_v35 = vsub.s32 6, %v4824_v26 }
 0x576   :  { %v1560_v38 = vpack.c.bf16 %v1278_v37, %v1232_v33  ;;  %v4123_v40 = vpop.f32.mrb[47].mxu0  ;;  %v4128_v41 = vpop.f32.mrb[37].mxu1 }
 0x577   :  { %v1281_v43 = vpop.f32.mrb[38].mxu1  ;;  %v1769_v37 = vrot.slane %v4827_v28, %v1768_v35 }
 0x578   :  { %v4129_v44 = vpop.f32.mrb[39].mxu1  ;;  %4169 = vmatmul.mubr.msk.bf16.vlgmr.msra.gmra.mrb[60].mxu0 %vm726_vm2, %v1560_v38 }
 0x579   :  { %4179 = vmatpush3.bf16.msra.mxu0 %v1662_v42  ;;  %4180 = vmatprep.mubr.msk.bf16.mxu0 %vm4677_vm1, %v4676_v16 }
 0x57a   :  { %4190 = vmatprep.subr.bf16.mxu0 %v4676_v16 }
 0x57b   :  { %v1324_v46 = vpop.f32.mrb[48].mxu0 }
 0x57c   :  { %v4134_v48 = vpop.f32.mrb[49].mxu0 }
 0x57d   :  { %v1327_v49 = vpop.f32.mrb[50].mxu0  ;;  %v1370_v50 = vpop.f32.mrb[40].mxu1 }
 0x57e   :  { %v1561_v51 = vpack.c.bf16 %v1370_v50, %v1324_v46  ;;  %v4135_v52 = vpop.f32.mrb[51].mxu0  ;;  %v4140_v53 = vpop.f32.mrb[41].mxu1  ;;  %v4524_v49 = vld [vmem:[#allocation2] sm:$0xff] }
 0x57f   :  { %v1373_v55 = vpop.f32.mrb[42].mxu1  ;;  %v4525_v52 = vld [vmem:[#allocation2 + $0x8] sm:$0xff] }
 0x580   :  { %v4141_v56 = vpop.f32.mrb[43].mxu1  ;;  %4175 = vmatmul.mubr.msk.bf16.vlgmr.msra.gmra.mrb[52].mxu1 %vm726_vm2, %v1561_v51 }
 0x581   :  { %4185 = vmatpush3.bf16.msra.mxu1 %v1709_v54  ;;  %4186 = vmatprep.mubr.msk.bf16.mxu1 %vm4677_vm1, %v4676_v16 }
 0x582   :  { %4196 = vmatprep.subr.bf16.mxu1 %v4676_v16 }
 0x583   :  { %v1416_v57 = vpop.f32.mrb[52].mxu0 }
 0x584   :  { %v4146_v58 = vpop.f32.mrb[53].mxu0 }
 0x585   :  { %v1419_v59 = vpop.f32.mrb[54].mxu0  ;;  %v1462_v60 = vpop.f32.mrb[44].mxu1 }
 0x586   :  { %v1562_v23 = vpack.c.bf16 %v1462_v60, %v1416_v57  ;;  %v4147_v61 = vpop.f32.mrb[55].mxu0  ;;  %v4152_v31 = vpop.f32.mrb[45].mxu1 }
 0x587   :  { %v1465_v0 = vpop.f32.mrb[46].mxu1 }
 0x588   :  { %v4153_v1 = vpop.f32.mrb[47].mxu1  ;;  %4181 = vmatmul.mubr.msk.bf16.vlgmr.msra.gmra.mrb[64].mxu0 %vm726_vm2, %v1562_v23 }
 0x589   :  { %4192 = vmatprep.mubr.msk.bf16.mxu0 %vm4677_vm1, %v4676_v16  ;;  %v1812_v1 = vld [vmem:[#allocation5] sm:$0xf] }
 0x58b   :  { %v1508_v3 = vpop.f32.mrb[56].mxu0 }
 0x58c   :  { %v4158_v5 = vpop.f32.mrb[57].mxu0 }
 0x58d   :  { %v1511_v6 = vpop.f32.mrb[58].mxu0  ;;  %v1554_v7 = vpop.f32.mrb[48].mxu1  ;;  %v1831_v5 = vsel %vm118_vm0, %v1812_v1, 0 }
 0x58e   :  { %v1563_v8 = vpack.c.bf16 %v1554_v7, %v1508_v3  ;;  %v4159_v9 = vpop.f32.mrb[59].mxu0  ;;  %v4164_v10 = vpop.f32.mrb[49].mxu1  ;;  %v1813_v3 = vld [vmem:[#allocation5 + $0x4] sm:$0xf]  ;;  %4191 = vmatpush3.bf16.xpose.msra.mxu0 %v1831_v5 }
 0x58f   :  { %v1557_v63 = vpop.f32.mrb[50].mxu1  ;;  %v1875_v6 = vsel %vm118_vm0, %v1813_v3, 0  ;;  %4202 = vmatprep.subr.bf16.mxu0 %v4676_v16 }
 0x590   :  { %v4165_v11 = vpop.f32.mrb[51].mxu1  ;;  %4187 = vmatmul.mubr.msk.bf16.vlgmr.msra.gmra.mrb[56].mxu1 %vm726_vm2, %v1563_v8 }
 0x591   :  { %4198 = vmatprep.mubr.msk.bf16.mxu1 %vm4677_vm1, %v4676_v16  ;;  %4197 = vmatpush3.bf16.xpose.msra.mxu1 %v1875_v6 }
 0x592   :  { %4208 = vmatprep.subr.bf16.mxu1 %v4676_v16 }
 0x64b   :  { %v1604_v4 = vpop.f32.mrb[60].mxu0 }
 0x64c   :  { %v4170_v12 = vpop.f32.mrb[61].mxu0  ;;  %v1752_v15 = vsel %vm118_vm0, %v1604_v4, 0.0  ;;  %v1802_v4 = vsub.s32 2, %v4824_v26 }
 0x64d   :  { %v1607_v13 = vpop.f32.mrb[62].mxu0 }
 0x64e   :  { %v4171_v14 = vpop.f32.mrb[63].mxu0  ;;  %v1759_v19 = vsel %vm118_vm0, %v1607_v13, 0.0  ;;  %v1803_v12 = vrot.slane %v4827_v28, %v1802_v4  ;;  %v1808_v13 = vsub.s32 3, %v4824_v26 }
 0x653   :  { %v1651_v2 = vpop.f32.mrb[52].mxu1 }
 0x654   :  { %v1753_v62 = vsel %vm118_vm0, %v1651_v2, 0.0  ;;  %v4176_v18 = vpop.f32.mrb[53].mxu1 }
 0x655   :  { %v1754_v17 = vadd.f32 %v1753_v62, %v1752_v15  ;;  %v1654_v39 = vpop.f32.mrb[54].mxu1 }
 0x656   :  { %v1760_v45 = vsel %vm118_vm0, %v1654_v39, 0.0  ;;  %v4177_v20 = vpop.f32.mrb[55].mxu1 }
 0x657   :  { %v1761_v21 = vadd.f32 %v1760_v45, %v1759_v19  ;;  %v1814_v19 = vld [vmem:[#allocation5 + $0x8] sm:$0xf]  ;;  %v1815_v45 = vld [vmem:[#allocation5 + $0xc] sm:$0xf] }
 0x65b   :  { %v1698_v22 = vpop.f32.mrb[64].mxu0 }
 0x65c   :  { %v1755_v24 = vsel %vm118_vm0, %v1698_v22, 0.0  ;;  %v4182_v25 = vpop.f32.mrb[65].mxu0 }
 0x65d   :  { %v1756_v29 = vadd.f32 %v1755_v24, %v1754_v17  ;;  %v1701_v30 = vpop.f32.mrb[66].mxu0  ;;  %v1809_v17 = vrot.slane %v4827_v28, %v1808_v13  ;;  %v1919_v24 = vsel %vm118_vm0, %v1814_v19, 0  ;;  %v1963_v25 = vsel %vm118_vm0, %v1815_v45, 0  ;;  %v104_v28 = vld [vmem:[%s5467_s1] sm:$0xff] }
 0x65e   :  { %v1762_v32 = vsel %vm118_vm0, %v1701_v30, 0.0  ;;  %v4183_v33 = vpop.f32.mrb[67].mxu0  ;;  %v1817_v30 = vld [vmem:[#allocation5 + $0x14] sm:$0xf] }
 0x65f   :  { %v1763_v34 = vadd.f32 %v1762_v32, %v1761_v21  ;;  %v105_v32 = vld [vmem:[%s5467_s1 + $0x8] sm:$0xff] }
 0x660   :  { %v1825_v35 = vpack.c.bf16 %v105_v32, %v104_v28 }
 0x663   :  { %v1745_v36 = vpop.f32.mrb[56].mxu1 }
 0x664   :  { %v1757_v38 = vsel %vm118_vm0, %v1745_v36, 0.0  ;;  %v4188_v40 = vpop.f32.mrb[57].mxu1  ;;  %v1818_v36 = vld [vmem:[#allocation5 + $0x18] sm:$0xf] }
 0x665   :  { %v1758_v41 = vadd.f32 %v1757_v38, %v1756_v29  ;;  %v1748_v42 = vpop.f32.mrb[58].mxu1  ;;  %v1816_v29 = vld [vmem:[#allocation5 + $0x10] sm:$0xf]  ;;  %v106_v38 = vld [vmem:[%s5467_s1 + $0x10] sm:$0xff]  ;;  %v107_v40 = vld [vmem:[%s5467_s1 + $0x18] sm:$0xff] }
 0x666   :  { %v1764_v43 = vsel %vm118_vm0, %v1748_v42, 0.0  ;;  %v4189_v44 = vpop.f32.mrb[59].mxu1  ;;  %v2013_v33 = vsel %vm118_vm0, %v1816_v29, 0  ;;  %v2117_v42 = vsel %vm118_vm0, %v1818_v36, 0 }
 0x667   :  { %v1770_v46 = vadd.f32 %v1769_v37, %v1758_v41  ;;  %v1765_v47 = vadd.f32 %v1764_v43, %v1763_v34  ;;  %v2065_v34 = vsel %vm118_vm0, %v1817_v30, 0  ;;  %v1826_v41 = vpack.c.bf16 %v107_v40, %v106_v38  ;;  %v1820_v44 = vld [vmem:[#allocation5 + $0x20] sm:$0xf] }
 0x669   :  { %v1771_v48 = vadd.f32 %v1769_v37, %v1765_v47  ;;  %v5118_v50 = vadd.f32 %v4524_v49, %v1770_v46  ;;  %v1819_v37 = vld [vmem:[#allocation5 + $0x1c] sm:$0xf]  ;;  %v1821_v46 = vld [vmem:[#allocation5 + $0x24] sm:$0xf]  ;;  %v2221_v47 = vsel %vm118_vm0, %v1820_v44, 0 }
 0x66a   :  { %v2169_v43 = vsel %vm118_vm0, %v1819_v37, 0  ;;  %v1822_v49 = vld [vmem:[#allocation5 + $0x28] sm:$0xf] }
 0x66b   :  { %v1774_v51 = vsel %vm118_vm0, %v5118_v50, 0.0  ;;  %v5122_v53 = vadd.f32 %v4525_v52, %v1771_v48  ;;  %v2273_v48 = vsel %vm118_vm0, %v1821_v46, 0  ;;  %v2325_v52 = vsel %vm118_vm0, %v1822_v49, 0 }
 0x66c   :  { %1775 = vadd.xlane.f32.xlu0 %v1774_v51  ;;  %v1823_v51 = vld [vmem:[#allocation5 + $0x2c] sm:$0xf] }
 0x66d   :  { %v1777_v54 = vsel %vm118_vm0, %v5122_v53, 0.0 }
 0x66e   :  { %1778 = vadd.xlane.f32.xlu1 %v1777_v54  ;;  %v2377_v54 = vsel %vm118_vm0, %v1823_v51, 0 }
 0x6f9   :  { %v1776_v55 = vpop.xlane.xlu0 %1775 }
 0x6fa   :  { %v1780_v56 = vmul.f32 0.03125, %v1776_v55 }
 0x6fb   :  { %v1779_v57 = vpop.xlane.xlu1 %1778 }
 0x6fc   :  { %v1782_v58 = vsub.f32 %v5118_v50, %v1780_v56  ;;  %v1781_v59 = vmul.f32 0.03125, %v1779_v57 }
 0x6fe   :  { %v1783_v60 = vsub.f32 %v5122_v53, %v1781_v59  ;;  %v1784_v23 = vmul.f32 %v1782_v58, %v1782_v58 }
 0x700   :  { %v1786_v61 = vsel %vm118_vm0, %v1784_v23, 0.0  ;;  %v1785_v31 = vmul.f32 %v1783_v60, %v1783_v60 }
 0x701   :  { %1787 = vadd.xlane.f32.xlu0 %v1786_v61 }
 0x702   :  { %v1789_v0 = vsel %vm118_vm0, %v1785_v31, 0.0 }
 0x703   :  { %1790 = vadd.xlane.f32.xlu1 %v1789_v0 }
 0x78e   :  { %v1788_v7 = vpop.xlane.xlu0 %1787 }
 0x78f   :  { %v1792_v8 = vmul.f32 0.03125, %v1788_v7 }
 0x790   :  { %v1791_v9 = vpop.xlane.xlu1 %1790 }
 0x791   :  { %v1794_v10 = vadd.f32 1e-05, %v1792_v8  ;;  %v1793_v63 = vmul.f32 0.03125, %v1791_v9 }
 0x793   :  { %4476 = vrsqrt.f32 %v1794_v10  ;;  %v1795_v11 = vadd.f32 1e-05, %v1793_v63 }
 0x795   :  { %4478 = vrsqrt.f32 %v1795_v11 }
 0x79d   :  { %v4477_v14 = vpop.eup %4476 }
 0x79e   :  { %v1798_v2 = vmul.f32 %v4477_v14, %v1782_v58 }
 0x79f   :  { %v4479_v15 = vpop.eup %4478 }
 0x7a0   :  { %v1804_v62 = vmul.f32 %v1803_v12, %v1798_v2  ;;  %v1799_v18 = vmul.f32 %v4479_v15, %v1783_v60 }
 0x7a2   :  { %v1805_v39 = vmul.f32 %v1803_v12, %v1799_v18  ;;  %v1810_v20 = vadd.f32 %v1809_v17, %v1804_v62 }
 0x7a4   :  { %v1811_v21 = vadd.f32 %v1809_v17, %v1805_v39 }
 0x7a6   :  { %v1824_v22 = vpack.c.bf16 %v1811_v21, %v1810_v20 }
 0x7a8   :  { %4193 = vmatmul.mubr.msk.bf16.vlgmr.msra.gmra.mrb[68].mxu0 %vm118_vm0, %v1824_v22  ;;  %4199 = vmatmul.mubr.msk.bf16.vlgmr.msra.gmra.mrb[60].mxu1 %vm118_vm0, %v1824_v22 }
 0x7a9   :  { %4203 = vmatpush3.bf16.xpose.msra.mxu0 %v1919_v24  ;;  %4209 = vmatpush3.bf16.xpose.msra.mxu1 %v1963_v25 }
 0x7aa   :  { %4204 = vmatprep.mubr.msk.bf16.mxu0 %vm4677_vm1, %v4676_v16  ;;  %4210 = vmatprep.mubr.msk.bf16.mxu1 %vm4677_vm1, %v4676_v16 }
 0x7ab   :  { %4410 = vmatprep.subr.msk.bf16.mxu0 %vm118_vm0, %v1816_v29  ;;  %4411 = vmatprep.subr.msk.bf16.mxu1 %vm118_vm0, %v1817_v30 }
 0x7b0   :  { %4205 = vmatmul.mubr.msk.bf16.vlgmr.msra.gmra.mrb[72].mxu0 %vm118_vm0, %v1824_v22  ;;  %4211 = vmatmul.mubr.msk.bf16.vlgmr.msra.gmra.mrb[64].mxu1 %vm118_vm0, %v1824_v22 }
 0x7b1   :  { %4215 = vmatpush3.bf16.xpose.msra.mxu0 %v2013_v33  ;;  %4221 = vmatpush3.bf16.xpose.msra.mxu1 %v2065_v34 }
 0x7b2   :  { %4216 = vmatprep.mubr.msk.bf16.mxu0 %vm118_vm0, %v1825_v35  ;;  %4222 = vmatprep.mubr.msk.bf16.mxu1 %vm118_vm0, %v1825_v35 }
 0x7b3   :  { %4412 = vmatprep.subr.msk.bf16.mxu0 %vm118_vm0, %v1818_v36  ;;  %4413 = vmatprep.subr.msk.bf16.mxu1 %vm118_vm0, %v1819_v37 }
 0x7b8   :  { %4217 = vmatmul.mubr.msk.bf16.vlgmr.msra.gmra.mrb[76].mxu0 %vm118_vm0, %v1826_v41  ;;  %4223 = vmatmul.mubr.msk.bf16.vlgmr.msra.gmra.mrb[68].mxu1 %vm118_vm0, %v1826_v41 }
 0x7b9   :  { %4227 = vmatpush3.bf16.xpose.msra.mxu0 %v2117_v42  ;;  %4228 = vmatprep.mubr.msk.bf16.mxu0 %vm118_vm0, %v1825_v35 }
 0x7ba   :  { %4233 = vmatpush3.bf16.xpose.msra.mxu1 %v2169_v43  ;;  %4234 = vmatprep.mubr.msk.bf16.mxu1 %vm118_vm0, %v1825_v35 }
 0x7bb   :  { %4414 = vmatprep.subr.msk.bf16.mxu0 %vm118_vm0, %v1820_v44  ;;  %4415 = vmatprep.subr.msk.bf16.mxu1 %vm118_vm0, %v1821_v46 }
 0x7c0   :  { %4229 = vmatmul.mubr.msk.bf16.vlgmr.msra.gmra.mrb[80].mxu0 %vm118_vm0, %v1826_v41 }
 0x7c1   :  { %4235 = vmatmul.mubr.msk.bf16.vlgmr.msra.gmra.mrb[72].mxu1 %vm118_vm0, %v1826_v41  ;;  %4240 = vmatprep.mubr.msk.bf16.mxu0 %vm118_vm0, %v1825_v35 }
 0x7c2   :  { %4246 = vmatprep.mubr.msk.bf16.mxu1 %vm118_vm0, %v1825_v35  ;;  %4239 = vmatpush3.bf16.xpose.msra.mxu0 %v2221_v47 }
 0x7c3   :  { %4245 = vmatpush3.bf16.xpose.msra.mxu1 %v2273_v48  ;;  %4416 = vmatprep.subr.msk.bf16.mxu0 %vm118_vm0, %v1822_v49 }
 0x7c4   :  { %4417 = vmatprep.subr.msk.bf16.mxu1 %vm118_vm0, %v1823_v51 }
 0x7c9   :  { %4241 = vmatmul.mubr.msk.bf16.vlgmr.msra.gmra.mrb[84].mxu0 %vm118_vm0, %v1826_v41 }
 0x7ca   :  { %4247 = vmatmul.mubr.msk.bf16.vlgmr.msra.gmra.mrb[76].mxu1 %vm118_vm0, %v1826_v41  ;;  %4251 = vmatpush3.bf16.xpose.msra.mxu0 %v2325_v52 }
 0x7cb   :  { %4257 = vmatpush3.bf16.xpose.msra.mxu1 %v2377_v54  ;;  %4252 = vmatprep.mubr.msk.bf16.mxu0 %vm118_vm0, %v1825_v35 }
 0x7cc   :  { %4258 = vmatprep.mubr.msk.bf16.mxu1 %vm118_vm0, %v1825_v35  ;;  %4268 = vmatprep.subr.bf16.mxu1 %v4676_v16 }
 0x7cd   :  { %4262 = vmatprep.subr.bf16.mxu0 %v4676_v16 }
 0x7d1   :  { %4253 = vmatmul.mubr.msk.bf16.vlgmr.msra.gmra.mrb[88].mxu0 %vm118_vm0, %v1826_v41 }
 0x7d2   :  { %4259 = vmatmul.mubr.msk.bf16.vlgmr.msra.gmra.mrb[80].mxu1 %vm118_vm0, %v1826_v41  ;;  %4264 = vmatprep.mubr.msk.bf16.mxu0 %vm4677_vm1, %v4676_v16 }
 0x7d3   :  { %4270 = vmatprep.mubr.msk.bf16.mxu1 %vm4677_vm1, %v4676_v16 }
 0x87b   :  { %v1867_v55 = vpop.f32.mrb[68].mxu0  ;;  %v5198_v56 = vpop.f32.mrb[60].mxu1 }
 0x87c   :  { %v4194_v57 = vpop.f32.mrb[69].mxu0  ;;  %v4200_v58 = vpop.f32.mrb[61].mxu1  ;;  %v2428_v28 = vpack.c.bf16 %v1867_v55, %v1867_v55  ;;  %v2430_v40 = vpack.c.bf16 %v5198_v56, %v5198_v56 }
 0x87d   :  { %v1870_v59 = vpop.f32.mrb[70].mxu0  ;;  %v1914_v60 = vpop.f32.mrb[62].mxu1 }
 0x87e   :  { %v4195_v23 = vpop.f32.mrb[71].mxu0  ;;  %v4201_v61 = vpop.f32.mrb[63].mxu1  ;;  %v2429_v24 = vpack.c.bf16 %v1870_v59, %v1870_v59  ;;  %v2431_v38 = vpack.c.bf16 %v1914_v60, %v1914_v60 }
 0x883   :  { %v5200_v31 = vpop.f32.mrb[72].mxu0  ;;  %v5202_v0 = vpop.f32.mrb[64].mxu1 }
 0x884   :  { %v4206_v1 = vpop.f32.mrb[73].mxu0  ;;  %v4212_v3 = vpop.f32.mrb[65].mxu1  ;;  %v2432_v44 = vpack.c.bf16 %v5200_v31, %v5200_v31  ;;  %v2434_v49 = vpack.c.bf16 %v5202_v0, %v5202_v0 }
 0x885   :  { %v1958_v5 = vpop.f32.mrb[74].mxu0  ;;  %v5204_v6 = vpop.f32.mrb[66].mxu1 }
 0x886   :  { %v4207_v7 = vpop.f32.mrb[75].mxu0  ;;  %v4213_v8 = vpop.f32.mrb[67].mxu1  ;;  %v2433_v43 = vpack.c.bf16 %v1958_v5, %v1958_v5  ;;  %v2435_v48 = vpack.c.bf16 %v5204_v6, %v5204_v6 }
 0x88b   :  { %v4218_v9 = vpop.f32.mrb[76].mxu0  ;;  %v4224_v10 = vpop.f32.mrb[68].mxu1 }
 0x88c   :  { %v2049_v63 = vpop.f32.mrb[77].mxu0  ;;  %v2101_v11 = vpop.f32.mrb[69].mxu1 }
 0x88d   :  { %v4219_v4 = vpop.f32.mrb[78].mxu0  ;;  %v4225_v12 = vpop.f32.mrb[70].mxu1 }
 0x88e   :  { %v2437_v13 = vpack.c.bf16 %v4219_v4, %v4218_v9  ;;  %v2052_v14 = vpop.f32.mrb[79].mxu0  ;;  %v2439_v2 = vpack.c.bf16 %v4225_v12, %v4224_v10  ;;  %v2104_v15 = vpop.f32.mrb[71].mxu1 }
 0x88f   :  { %v2436_v62 = vpack.c.bf16 %v2052_v14, %v2049_v63  ;;  %v2438_v18 = vpack.c.bf16 %v2104_v15, %v2101_v11 }
 0x890   :  { %v2502_v17 = vsel %vm726_vm2, %v2437_v13, 0  ;;  %v2594_v35 = vsel %vm726_vm2, %v2439_v2, 0 }
 0x891   :  { %v2456_v39 = vsel %vm726_vm2, %v2436_v62, 0  ;;  %4269 = vmatpush3.bf16.xpose.msra.mxu1 %v2502_v17  ;;  %v2548_v37 = vsel %vm726_vm2, %v2438_v18, 0 }
 0x892   :  { %4263 = vmatpush3.bf16.xpose.msra.mxu0 %v2456_v39  ;;  %4280 = vmatprep.subr.bf16.mxu1 %v4676_v16 }
 0x893   :  { %v4230_v19 = vpop.f32.mrb[80].mxu0  ;;  %4274 = vmatprep.subr.bf16.mxu0 %v4676_v16 }
 0x894   :  { %v2153_v45 = vpop.f32.mrb[81].mxu0  ;;  %v4236_v20 = vpop.f32.mrb[72].mxu1 }
 0x895   :  { %v4231_v21 = vpop.f32.mrb[82].mxu0  ;;  %v2205_v22 = vpop.f32.mrb[73].mxu1 }
 0x896   :  { %v2441_v25 = vpack.c.bf16 %v4231_v21, %v4230_v19  ;;  %v2156_v29 = vpop.f32.mrb[83].mxu0  ;;  %v4237_v30 = vpop.f32.mrb[74].mxu1 }
 0x897   :  { %v2440_v32 = vpack.c.bf16 %v2156_v29, %v2153_v45  ;;  %v2443_v33 = vpack.c.bf16 %v4237_v30, %v4236_v20  ;;  %v2208_v34 = vpop.f32.mrb[75].mxu1 }
 0x898   :  { %4271 = vmatmul.mubr.msk.bf16.vlgmr.msra.gmra.mrb[84].mxu1 %vm726_vm2, %v2429_v24  ;;  %v2442_v36 = vpack.c.bf16 %v2208_v34, %v2205_v22  ;;  %v2686_v41 = vsel %vm726_vm2, %v2441_v25, 0 }
 0x899   :  { %4265 = vmatmul.mubr.msk.bf16.vlgmr.msra.gmra.mrb[92].mxu0 %vm726_vm2, %v2428_v28  ;;  %4281 = vmatpush3.bf16.xpose.msra.mxu1 %v2594_v35  ;;  %v2640_v42 = vsel %vm726_vm2, %v2440_v32, 0  ;;  %v2778_v46 = vsel %vm726_vm2, %v2443_v33, 0 }
 0x89a   :  { %4275 = vmatpush3.bf16.xpose.msra.mxu0 %v2548_v37  ;;  %4282 = vmatprep.mubr.msk.bf16.mxu1 %vm4677_vm1, %v4676_v16  ;;  %v2732_v47 = vsel %vm726_vm2, %v2442_v36, 0 }
 0x89b   :  { %4276 = vmatprep.mubr.msk.bf16.mxu0 %vm4677_vm1, %v4676_v16  ;;  %4292 = vmatprep.subr.bf16.mxu1 %v4676_v16 }
 0x89c   :  { %4286 = vmatprep.subr.bf16.mxu0 %v4676_v16  ;;  %v4242_v51 = vpop.f32.mrb[84].mxu0 }
 0x89d   :  { %v5254_v52 = vpop.f32.mrb[76].mxu1  ;;  %v2257_v54 = vpop.f32.mrb[85].mxu0 }
 0x89e   :  { %v5256_v55 = vpop.f32.mrb[77].mxu1  ;;  %v4243_v56 = vpop.f32.mrb[86].mxu0 }
 0x89f   :  { %v5258_v57 = vpop.f32.mrb[78].mxu1  ;;  %v2445_v58 = vpack.c.bf16 %v4243_v56, %v4242_v51  ;;  %v2260_v60 = vpop.f32.mrb[87].mxu0 }
 0x8a0   :  { %4283 = vmatmul.mubr.msk.bf16.vlgmr.msra.gmra.mrb[88].mxu1 %vm726_vm2, %v2431_v38  ;;  %v2447_v59 = vpack.c.bf16 %v5258_v57, %v5254_v52  ;;  %v5262_v23 = vpop.f32.mrb[79].mxu1  ;;  %v2444_v61 = vpack.c.bf16 %v2260_v60, %v2257_v54 }
 0x8a1   :  { %4277 = vmatmul.mubr.msk.bf16.vlgmr.msra.gmra.mrb[96].mxu0 %vm726_vm2, %v2430_v40  ;;  %4293 = vmatpush3.bf16.xpose.msra.mxu1 %v2686_v41  ;;  %v2446_v31 = vpack.c.bf16 %v5262_v23, %v5256_v55 }
 0x8a2   :  { %4287 = vmatpush3.bf16.xpose.msra.mxu0 %v2640_v42  ;;  %4294 = vmatprep.mubr.msk.bf16.mxu1 %vm4677_vm1, %v4676_v16 }
 0x8a3   :  { %4288 = vmatprep.mubr.msk.bf16.mxu0 %vm4677_vm1, %v4676_v16  ;;  %4304 = vmatprep.subr.bf16.mxu1 %v4676_v16 }
 0x8a4   :  { %4298 = vmatprep.subr.bf16.mxu0 %v4676_v16  ;;  %v5268_v0 = vpop.f32.mrb[88].mxu0 }
 0x8a5   :  { %v5270_v1 = vpop.f32.mrb[80].mxu1  ;;  %v5272_v3 = vpop.f32.mrb[89].mxu0 }
 0x8a6   :  { %v5274_v5 = vpop.f32.mrb[81].mxu1  ;;  %v5276_v6 = vpop.f32.mrb[90].mxu0 }
 0x8a7   :  { %v5278_v7 = vpop.f32.mrb[82].mxu1  ;;  %v2449_v8 = vpack.c.bf16 %v5276_v6, %v5268_v0  ;;  %v5284_v10 = vpop.f32.mrb[91].mxu0 }
 0x8a8   :  { %4295 = vmatmul.mubr.msk.bf16.vlgmr.msra.gmra.mrb[92].mxu1 %vm726_vm2, %v2433_v43  ;;  %v2451_v9 = vpack.c.bf16 %v5278_v7, %v5270_v1  ;;  %v5286_v63 = vpop.f32.mrb[83].mxu1  ;;  %v2448_v11 = vpack.c.bf16 %v5284_v10, %v5272_v3 }
 0x8a9   :  { %4289 = vmatmul.mubr.msk.bf16.vlgmr.msra.gmra.mrb[100].mxu0 %vm726_vm2, %v2432_v44  ;;  %4305 = vmatpush3.bf16.xpose.msra.mxu1 %v2778_v46  ;;  %v2450_v4 = vpack.c.bf16 %v5286_v63, %v5274_v5  ;;  %v114_v5 = vld [vmem:[#allocation7 + $0x10] sm:$0xf] }
 0x8aa   :  { %4299 = vmatpush3.bf16.xpose.msra.mxu0 %v2732_v47  ;;  %4306 = vmatprep.mubr.msk.bf16.mxu1 %vm4677_vm1, %v4676_v16  ;;  %v3269_v63 = vsel %vm1194_vm3, %v114_v5, 0 }
 0x8ab   :  { %4300 = vmatprep.mubr.msk.bf16.mxu0 %vm4677_vm1, %v4676_v16  ;;  %4310 = vmatprep.subr.bf16.mxu0 %v4676_v16 }
 0x8ac   :  { %4316 = vmatprep.subr.bf16.mxu1 %v4676_v16 }
 0x8b0   :  { %4307 = vmatmul.mubr.msk.bf16.vlgmr.msra.gmra.mrb[96].mxu1 %vm726_vm2, %v2435_v48 }
 0x8b1   :  { %4301 = vmatmul.mubr.msk.bf16.vlgmr.msra.gmra.mrb[104].mxu0 %vm726_vm2, %v2434_v49  ;;  %4318 = vmatprep.mubr.msk.bf16.mxu1 %vm4677_vm1, %v4676_v16 }
 0x8b2   :  { %4312 = vmatprep.mubr.msk.bf16.mxu0 %vm4677_vm1, %v4676_v16  ;;  %4317 = vmatpush3.bf16.msra.mxu1 %v2445_v58 }
 0x8b3   :  { %4311 = vmatpush3.bf16.msra.mxu0 %v2444_v61  ;;  %4328 = vmatprep.subr.bf16.mxu1 %v4676_v16 }
 0x8b4   :  { %4322 = vmatprep.subr.bf16.mxu0 %v4676_v16 }
 0x96b   :  { %v2538_v12 = vpop.f32.mrb[84].mxu1 }
 0x96c   :  { %v2492_v13 = vpop.f32.mrb[92].mxu0  ;;  %v4272_v14 = vpop.f32.mrb[85].mxu1  ;;  %v2824_v2 = vsel %vm2820_vm4, %v2538_v12, -inf }
 0x96d   :  { %2825 = vmax.xlane.f32.xlu1 %v2824_v2  ;;  %v4266_v15 = vpop.f32.mrb[93].mxu0  ;;  %v2541_v62 = vpop.f32.mrb[86].mxu1  ;;  %v2821_v18 = vsel %vm2820_vm4, %v2492_v13, -inf }
 0x96e   :  { %v4273_v17 = vpop.f32.mrb[87].mxu1  ;;  %2822 = vmax.xlane.f32.xlu0 %v2821_v18  ;;  %v2495_v39 = vpop.f32.mrb[94].mxu0 }
 0x96f   :  { %v4267_v19 = vpop.f32.mrb[95].mxu0 }
 0x973   :  { %v2630_v45 = vpop.f32.mrb[88].mxu1 }
 0x974   :  { %v2584_v20 = vpop.f32.mrb[96].mxu0  ;;  %v4284_v21 = vpop.f32.mrb[89].mxu1  ;;  %v2830_v22 = vsel %vm2820_vm4, %v2630_v45, -inf }
 0x975   :  { %2831 = vmax.xlane.f32.xlu1 %v2830_v22  ;;  %v4278_v24 = vpop.f32.mrb[97].mxu0  ;;  %v2633_v25 = vpop.f32.mrb[90].mxu1  ;;  %v2827_v29 = vsel %vm2820_vm4, %v2584_v20, -inf }
 0x976   :  { %v4285_v30 = vpop.f32.mrb[91].mxu1  ;;  %2828 = vmax.xlane.f32.xlu0 %v2827_v29  ;;  %v2587_v28 = vpop.f32.mrb[98].mxu0 }
 0x977   :  { %v4279_v32 = vpop.f32.mrb[99].mxu0 }
 0x97b   :  { %v2722_v33 = vpop.f32.mrb[92].mxu1 }
 0x97c   :  { %v2676_v34 = vpop.f32.mrb[100].mxu0  ;;  %v4296_v35 = vpop.f32.mrb[93].mxu1  ;;  %v2836_v36 = vsel %vm2820_vm4, %v2722_v33, -inf }
 0x97d   :  { %2837 = vmax.xlane.f32.xlu1 %v2836_v36  ;;  %v4290_v37 = vpop.f32.mrb[101].mxu0  ;;  %v2725_v38 = vpop.f32.mrb[94].mxu1  ;;  %v2833_v40 = vsel %vm2820_vm4, %v2676_v34, -inf }
 0x97e   :  { %v4297_v41 = vpop.f32.mrb[95].mxu1  ;;  %2834 = vmax.xlane.f32.xlu0 %v2833_v40  ;;  %v2679_v42 = vpop.f32.mrb[102].mxu0 }
 0x97f   :  { %v4291_v43 = vpop.f32.mrb[103].mxu0 }
 0x983   :  { %v2814_v44 = vpop.f32.mrb[96].mxu1 }
 0x984   :  { %v2768_v46 = vpop.f32.mrb[104].mxu0  ;;  %v4308_v47 = vpop.f32.mrb[97].mxu1  ;;  %v2842_v48 = vsel %vm2820_vm4, %v2814_v44, -inf }
 0x985   :  { %2843 = vmax.xlane.f32.xlu1 %v2842_v48  ;;  %v4302_v49 = vpop.f32.mrb[105].mxu0  ;;  %v2817_v51 = vpop.f32.mrb[98].mxu1  ;;  %v2839_v54 = vsel %vm2820_vm4, %v2768_v46, -inf }
 0x986   :  { %v4309_v56 = vpop.f32.mrb[99].mxu1  ;;  %2840 = vmax.xlane.f32.xlu0 %v2839_v54  ;;  %v2771_v58 = vpop.f32.mrb[106].mxu0 }
 0x987   :  { %v4303_v60 = vpop.f32.mrb[107].mxu0 }
 0x9fa   :  { %v2826_v61 = vpop.xlane.xlu1 %2825 }
 0x9fb   :  { %v2846_v14 = vsub.f32 %v2538_v12, %v2826_v61  ;;  %v2823_v2 = vpop.xlane.xlu0 %2822 }
 0x9fc   :  { %v2845_v15 = vsub.f32 %v2492_v13, %v2823_v2 }
 0x9fd   :  { %v2855_v62 = vmul.f32 1.442695, %v2846_v14 }
 0x9fe   :  { %v2853_v18 = vmul.f32 1.442695, %v2845_v15 }
 0x9ff   :  { %4480 = vpow2.f32 %v2855_v62 }
 0xa00   :  { %4482 = vpow2.f32 %v2853_v18 }
 0xa02   :  { %v2832_v17 = vpop.xlane.xlu1 %2831 }
 0xa03   :  { %v2848_v39 = vsub.f32 %v2630_v45, %v2832_v17  ;;  %v2829_v19 = vpop.xlane.xlu0 %2828 }
 0xa04   :  { %v2847_v21 = vsub.f32 %v2584_v20, %v2829_v19 }
 0xa05   :  { %v2859_v22 = vmul.f32 1.442695, %v2848_v39 }
 0xa06   :  { %v2857_v24 = vmul.f32 1.442695, %v2847_v21 }
 0xa07   :  { %4484 = vpow2.f32 %v2859_v22 }
 0xa08   :  { %4486 = vpow2.f32 %v2857_v24 }
 0xa09   :  { %v4481_v25 = vpop.eup %4480 }
 0xa0a   :  { %v4483_v29 = vpop.eup %4482  ;;  %v2838_v30 = vpop.xlane.xlu1 %2837  ;;  %v2872_v28 = vsel %vm2820_vm4, %v4481_v25, 0.0 }
 0xa0b   :  { %v2850_v12 = vsub.f32 %v2722_v33, %v2838_v30  ;;  %2873 = vadd.xlane.f32.xlu1 %v2872_v28  ;;  %v2835_v13 = vpop.xlane.xlu0 %2834  ;;  %v2869_v32 = vsel %vm2820_vm4, %v4483_v29, 0.0 }
 0xa0c   :  { %v2849_v35 = vsub.f32 %v2676_v34, %v2835_v13  ;;  %2870 = vadd.xlane.f32.xlu0 %v2869_v32  ;;  %v116_v13 = vld [vmem:[#allocation7 + $0x18] sm:$0xf] }
 0xa0d   :  { %v2863_v36 = vmul.f32 1.442695, %v2850_v12 }
 0xa0e   :  { %v2861_v45 = vmul.f32 1.442695, %v2849_v35 }
 0xa0f   :  { %4488 = vpow2.f32 %v2863_v36 }
 0xa10   :  { %4490 = vpow2.f32 %v2861_v45 }
 0xa11   :  { %v4485_v20 = vpop.eup %4484 }
 0xa12   :  { %v4487_v37 = vpop.eup %4486  ;;  %v2844_v38 = vpop.xlane.xlu1 %2843  ;;  %v2878_v40 = vsel %vm2820_vm4, %v4485_v20, 0.0 }
 0xa13   :  { %v2852_v41 = vsub.f32 %v2814_v44, %v2844_v38  ;;  %2879 = vadd.xlane.f32.xlu1 %v2878_v40  ;;  %v2841_v42 = vpop.xlane.xlu0 %2840  ;;  %v2875_v33 = vsel %vm2820_vm4, %v4487_v37, 0.0  ;;  %v3363_v38 = vsel %vm1194_vm3, %v116_v13, 0 }
 0xa14   :  { %v2851_v43 = vsub.f32 %v2768_v46, %v2841_v42  ;;  %2876 = vadd.xlane.f32.xlu0 %v2875_v33  ;;  %v117_v33 = vld [vmem:[#allocation7 + $0x1c] sm:$0xf] }
 0xa15   :  { %v2867_v47 = vmul.f32 1.442695, %v2852_v41 }
 0xa16   :  { %v2865_v48 = vmul.f32 1.442695, %v2851_v43 }
 0xa17   :  { %4492 = vpow2.f32 %v2867_v47 }
 0xa18   :  { %4494 = vpow2.f32 %v2865_v48 }
 0xa19   :  { %v4489_v34 = vpop.eup %4488 }
 0xa1a   :  { %v4491_v49 = vpop.eup %4490  ;;  %v2884_v51 = vsel %vm2820_vm4, %v4489_v34, 0.0 }
 0xa1b   :  { %2885 = vadd.xlane.f32.xlu1 %v2884_v51  ;;  %v2881_v54 = vsel %vm2820_vm4, %v4491_v49, 0.0 }
 0xa1c   :  { %2882 = vadd.xlane.f32.xlu0 %v2881_v54  ;;  %v3410_v54 = vsel %vm1194_vm3, %v117_v33, 0 }
 0xa21   :  { %v5306_v56 = vpop.eup %4492 }
 0xa22   :  { %v5308_v44 = vpop.eup %4494  ;;  %v2890_v46 = vsel %vm2820_vm4, %v5306_v56, 0.0 }
 0xa23   :  { %2891 = vadd.xlane.f32.xlu1 %v2890_v46  ;;  %v2887_v58 = vsel %vm2820_vm4, %v5308_v44, 0.0 }
 0xa24   :  { %2888 = vadd.xlane.f32.xlu0 %v2887_v58 }
 0xa98   :  { %v2874_v60 = vpop.xlane.xlu1 %2873 }
 0xa99   :  { %4496 = vrcp.f32 %v2874_v60  ;;  %v2871_v61 = vpop.xlane.xlu0 %2870 }
 0xa9a   :  { %4498 = vrcp.f32 %v2871_v61 }
 0xaa0   :  { %v2880_v14 = vpop.xlane.xlu1 %2879 }
 0xaa1   :  { %4500 = vrcp.f32 %v2880_v14  ;;  %v2877_v2 = vpop.xlane.xlu0 %2876 }
 0xaa2   :  { %4502 = vrcp.f32 %v2877_v2 }
 0xaa3   :  { %v4497_v15 = vpop.eup %4496 }
 0xaa4   :  { %v4499_v62 = vpop.eup %4498  ;;  %v2902_v18 = vmul.f32 %v4497_v15, %v4481_v25 }
 0xaa5   :  { %v2901_v17 = vmul.f32 %v4499_v62, %v4483_v29 }
 0xaa6   :  { %v2910_v39 = vpack.c.bf16 %v2902_v18, %v2902_v18 }
 0xaa7   :  { %v2909_v19 = vpack.c.bf16 %v2901_v17, %v2901_v17 }
 0xaa8   :  { %v2886_v21 = vpop.xlane.xlu1 %2885  ;;  %4319 = vmatmul.mubr.msk.bf16.vlgmr.msra.gmra.mrb[100].mxu1 %vm2820_vm4, %v2910_v39 }
 0xaa9   :  { %4504 = vrcp.f32 %v2886_v21  ;;  %4329 = vmatpush3.bf16.msra.mxu1 %v2447_v59  ;;  %4313 = vmatmul.mubr.msk.bf16.vlgmr.msra.gmra.mrb[108].mxu0 %vm2820_vm4, %v2909_v19  ;;  %v2883_v22 = vpop.xlane.xlu0 %2882 }
 0xaaa   :  { %4323 = vmatpush3.bf16.msra.mxu0 %v2446_v31  ;;  %4506 = vrcp.f32 %v2883_v22  ;;  %4330 = vmatprep.mubr.msk.bf16.mxu1 %vm4677_vm1, %v4676_v16 }
 0xaab   :  { %v4501_v24 = vpop.eup %4500  ;;  %4340 = vmatprep.subr.bf16.mxu1 %v4676_v16  ;;  %4324 = vmatprep.mubr.msk.bf16.mxu0 %vm4677_vm1, %v4676_v16 }
 0xaac   :  { %v4503_v25 = vpop.eup %4502  ;;  %v2904_v52 = vmul.f32 %v4501_v24, %v4485_v20  ;;  %4334 = vmatprep.subr.bf16.mxu0 %v4676_v16 }
 0xaad   :  { %v2903_v57 = vmul.f32 %v4503_v25, %v4487_v37 }
 0xaae   :  { %v2912_v59 = vpack.c.bf16 %v2904_v52, %v2904_v52 }
 0xaaf   :  { %v2911_v29 = vpack.c.bf16 %v2903_v57, %v2903_v57 }
 0xab0   :  { %v2892_v30 = vpop.xlane.xlu1 %2891  ;;  %4331 = vmatmul.mubr.msk.bf16.vlgmr.msra.gmra.mrb[104].mxu1 %vm2820_vm4, %v2912_v59 }
 0xab1   :  { %4508 = vrcp.f32 %v2892_v30  ;;  %4341 = vmatpush3.bf16.msra.mxu1 %v2449_v8  ;;  %4325 = vmatmul.mubr.msk.bf16.vlgmr.msra.gmra.mrb[112].mxu0 %vm2820_vm4, %v2911_v29  ;;  %v2889_v55 = vpop.xlane.xlu0 %2888 }
 0xab2   :  { %4510 = vrcp.f32 %v2889_v55  ;;  %4335 = vmatpush3.bf16.msra.mxu0 %v2448_v11  ;;  %4342 = vmatprep.mubr.msk.bf16.mxu1 %vm4677_vm1, %v4676_v16 }
 0xab3   :  { %v4505_v23 = vpop.eup %4504  ;;  %4352 = vmatprep.subr.bf16.mxu1 %v4676_v16  ;;  %4336 = vmatprep.mubr.msk.bf16.mxu0 %vm4677_vm1, %v4676_v16 }
 0xab4   :  { %v4507_v31 = vpop.eup %4506  ;;  %v2906_v0 = vmul.f32 %v4505_v23, %v4489_v34  ;;  %4346 = vmatprep.subr.bf16.mxu0 %v4676_v16 }
 0xab5   :  { %v2905_v6 = vmul.f32 %v4507_v31, %v4491_v49 }
 0xab6   :  { %v2914_v8 = vpack.c.bf16 %v2906_v0, %v2906_v0 }
 0xab7   :  { %v2913_v28 = vpack.c.bf16 %v2905_v6, %v2905_v6 }
 0xab8   :  { %4343 = vmatmul.mubr.msk.bf16.vlgmr.msra.gmra.mrb[108].mxu1 %vm2820_vm4, %v2914_v8 }
 0xab9   :  { %4353 = vmatpush3.bf16.msra.mxu1 %v2451_v9  ;;  %4337 = vmatmul.mubr.msk.bf16.vlgmr.msra.gmra.mrb[116].mxu0 %vm2820_vm4, %v2913_v28 }
 0xaba   :  { %4347 = vmatpush3.bf16.msra.mxu0 %v2450_v4  ;;  %4354 = vmatprep.mubr.msk.bf16.mxu1 %vm4677_vm1, %v4676_v16  ;;  %v115_v4 = vld [vmem:[#allocation7 + $0x14] sm:$0xf] }
 0xabb   :  { %v4509_v3 = vpop.eup %4508  ;;  %4348 = vmatprep.mubr.msk.bf16.mxu0 %vm4677_vm1, %v4676_v16  ;;  %4358 = vmatprep.subr.bf16.mxu0 %v4676_v16  ;;  %v3316_v12 = vsel %vm1194_vm3, %v115_v4, 0 }
 0xabc   :  { %v4511_v10 = vpop.eup %4510  ;;  %v2908_v11 = vmul.f32 %v4509_v3, %v5306_v56  ;;  %4364 = vmatprep.subr.bf16.mxu1 %v4676_v16 }
 0xabd   :  { %v2907_v1 = vmul.f32 %v4511_v10, %v5308_v44 }
 0xabe   :  { %v2916_v7 = vpack.c.bf16 %v2908_v11, %v2908_v11 }
 0xabf   :  { %v2915_v9 = vpack.c.bf16 %v2907_v1, %v2907_v1 }
 0xac0   :  { %4355 = vmatmul.mubr.msk.bf16.vlgmr.msra.gmra.mrb[112].mxu1 %vm2820_vm4, %v2916_v7 }
 0xac1   :  { %4349 = vmatmul.mubr.msk.bf16.vlgmr.msra.gmra.mrb[120].mxu0 %vm2820_vm4, %v2915_v9  ;;  %4366 = vmatprep.mubr.msk.bf16.mxu1 %vm4677_vm1, %v4676_v16 }
 0xac2   :  { %4360 = vmatprep.mubr.msk.bf16.mxu0 %vm4677_vm1, %v4676_v16  ;;  %4359 = vmatpush3.bf16.msra.mxu0 %v3269_v63 }
 0xac3   :  { %4370 = vmatprep.subr.bf16.mxu0 %v4676_v16  ;;  %4365 = vmatpush3.bf16.msra.mxu1 %v3316_v12 }
 0xac4   :  { %4376 = vmatprep.subr.bf16.mxu1 %v4676_v16 }
 0xb7b   :  { %v2997_v32 = vpop.f32.mrb[100].mxu1 }
 0xb7c   :  { %v2954_v35 = vpop.f32.mrb[108].mxu0  ;;  %v4320_v36 = vpop.f32.mrb[101].mxu1 }
 0xb7d   :  { %v3261_v45 = vpack.c.bf16 %v2997_v32, %v2954_v35  ;;  %v4314_v20 = vpop.f32.mrb[109].mxu0  ;;  %v3000_v37 = vpop.f32.mrb[102].mxu1  ;;  %v3469_v36 = vsub.s32 7, %v4824_v26 }
 0xb7e   :  { %v2957_v40 = vpop.f32.mrb[110].mxu0  ;;  %v4321_v41 = vpop.f32.mrb[103].mxu1  ;;  %v4526_v20 = vld [vmem:[#allocation10] sm:$0xff] }
 0xb7f   :  { %v4315_v42 = vpop.f32.mrb[111].mxu0  ;;  %4361 = vmatmul.mubr.msk.bf16.vlgmr.msra.gmra.mrb[124].mxu0 %vm726_vm2, %v3261_v45  ;;  %v3470_v37 = vrot.slane %v4526_v20, %v3469_v36 }
 0xb80   :  { %4371 = vmatpush3.bf16.msra.mxu0 %v3363_v38  ;;  %4372 = vmatprep.mubr.msk.bf16.mxu0 %vm4677_vm1, %v4676_v16 }
 0xb81   :  { %4382 = vmatprep.subr.bf16.mxu0 %v4676_v16 }
 0xb83   :  { %v3083_v43 = vpop.f32.mrb[104].mxu1 }
 0xb84   :  { %v3040_v47 = vpop.f32.mrb[112].mxu0  ;;  %v4332_v48 = vpop.f32.mrb[105].mxu1 }
 0xb85   :  { %v3262_v34 = vpack.c.bf16 %v3083_v43, %v3040_v47  ;;  %v4326_v49 = vpop.f32.mrb[113].mxu0  ;;  %v3086_v51 = vpop.f32.mrb[106].mxu1 }
 0xb86   :  { %v3043_v56 = vpop.f32.mrb[114].mxu0  ;;  %v4333_v44 = vpop.f32.mrb[107].mxu1 }
 0xb87   :  { %v4327_v46 = vpop.f32.mrb[115].mxu0  ;;  %4367 = vmatmul.mubr.msk.bf16.vlgmr.msra.gmra.mrb[116].mxu1 %vm726_vm2, %v3262_v34 }
 0xb88   :  { %4377 = vmatpush3.bf16.msra.mxu1 %v3410_v54  ;;  %4378 = vmatprep.mubr.msk.bf16.mxu1 %vm4677_vm1, %v4676_v16 }
 0xb89   :  { %4390 = vmatprep.subr.bf16.mxu1 %v4676_v16 }
 0xb8b   :  { %v3169_v58 = vpop.f32.mrb[108].mxu1 }
 0xb8c   :  { %v3126_v60 = vpop.f32.mrb[116].mxu0  ;;  %v4344_v61 = vpop.f32.mrb[109].mxu1 }
 0xb8d   :  { %v3263_v14 = vpack.c.bf16 %v3169_v58, %v3126_v60  ;;  %v4338_v2 = vpop.f32.mrb[117].mxu0  ;;  %v3172_v15 = vpop.f32.mrb[110].mxu1 }
 0xb8e   :  { %v3129_v62 = vpop.f32.mrb[118].mxu0  ;;  %v4345_v18 = vpop.f32.mrb[111].mxu1 }
 0xb8f   :  { %v4339_v17 = vpop.f32.mrb[119].mxu0  ;;  %4373 = vmatmul.mubr.msk.bf16.vlgmr.msra.gmra.mrb[128].mxu0 %vm726_vm2, %v3263_v14  ;;  %v4430_v62 = vld [vmem:[#allocation8] sm:$0xff]   ;;  %v4431_v18 = vld [vmem:[#allocation8 + $0x8] sm:$0xff]  }
 0xb90   :  { %4386 = vmatprep.mubr.msk.bf16.mxu0 %vm4677_vm1, %v4676_v16  ;;  %4383 = vmatpush3.bf16.msra.mxu0 %v4430_v62 }
 0xb91   :  { %4384 = vmatprep.subr.bf16.mxu0 %v4676_v16 }
 0xb93   :  { %v3255_v39 = vpop.f32.mrb[112].mxu1 }
 0xb94   :  { %v3212_v19 = vpop.f32.mrb[120].mxu0  ;;  %v4356_v21 = vpop.f32.mrb[113].mxu1  ;;  %4385 = vmatpush3.bf16.msra.mxu0 %v4431_v18 }
 0xb95   :  { %v3264_v22 = vpack.c.bf16 %v3255_v39, %v3212_v19  ;;  %v4350_v24 = vpop.f32.mrb[121].mxu0  ;;  %v3258_v25 = vpop.f32.mrb[114].mxu1 }
 0xb96   :  { %v3215_v52 = vpop.f32.mrb[122].mxu0  ;;  %v4357_v57 = vpop.f32.mrb[115].mxu1  ;;  %v3503_v25 = vsub.s32 4, %v4824_v26 }
 0xb97   :  { %v4351_v59 = vpop.f32.mrb[123].mxu0  ;;  %4379 = vmatmul.mubr.msk.bf16.vlgmr.msra.gmra.mrb[120].mxu1 %vm726_vm2, %v3264_v22  ;;  %v3509_v57 = vsub.s32 5, %v4824_v26 }
 0xb98   :  { %4406 = vmatprep.mubr.msk.bf16.mxu1 %vm4677_vm1, %v4676_v16  ;;  %v3504_v52 = vrot.slane %v4526_v20, %v3503_v25 }
 0xc52   :  { %v3305_v29 = vpop.f32.mrb[124].mxu0 }
 0xc53   :  { %v4362_v30 = vpop.f32.mrb[125].mxu0  ;;  %v3453_v0 = vsel %vm118_vm0, %v3305_v29, 0.0 }
 0xc54   :  { %v3308_v55 = vpop.f32.mrb[126].mxu0 }
 0xc55   :  { %v4363_v23 = vpop.f32.mrb[127].mxu0  ;;  %v3460_v10 = vsel %vm118_vm0, %v3308_v55, 0.0 }
 0xc5a   :  { %v3352_v31 = vpop.f32.mrb[116].mxu1 }
 0xc5b   :  { %v3454_v6 = vsel %vm118_vm0, %v3352_v31, 0.0  ;;  %v4368_v8 = vpop.f32.mrb[117].mxu1  ;;  %v3510_v31 = vrot.slane %v4526_v20, %v3509_v57 }
 0xc5c   :  { %v3455_v28 = vadd.f32 %v3454_v6, %v3453_v0  ;;  %v3355_v3 = vpop.f32.mrb[118].mxu1 }
 0xc5d   :  { %v3461_v11 = vsel %vm118_vm0, %v3355_v3, 0.0  ;;  %v4369_v1 = vpop.f32.mrb[119].mxu1  ;;  %v4432_v3 = vld [vmem:[%s5472_s6] sm:$0xff]  }
 0xc5e   :  { %v3462_v7 = vadd.f32 %v3461_v11, %v3460_v10  ;;  %4391 = vmatpush3.bf16.msra.mxu1 %v4432_v3  ;;  %v4433_v10 = vld [vmem:[%s5472_s6 + $0x8] sm:$0xff]   ;;  %v4434_v11 = vld [vmem:[%s5472_s6 + $0x10] sm:$0xff]   ;;  %v4435_v1 = vld [vmem:[%s5472_s6 + $0x18] sm:$0xff]  }
 0xc5f   :  { %4392 = vmatprep.subr.bf16.mxu1 %v4676_v16 }
 0xc62   :  { %v3399_v9 = vpop.f32.mrb[128].mxu0  ;;  %4393 = vmatpush3.bf16.msra.mxu1 %v4433_v10 }
 0xc63   :  { %v3456_v5 = vsel %vm118_vm0, %v3399_v9, 0.0  ;;  %v4374_v63 = vpop.f32.mrb[129].mxu0  ;;  %4394 = vmatprep.subr.bf16.mxu1 %v4676_v16  ;;  %v4437_v9 = vld [vmem:[%s5472_s6 + $0x28] sm:$0xff]  }
 0xc64   :  { %v3457_v4 = vadd.f32 %v3456_v5, %v3455_v28  ;;  %v3402_v12 = vpop.f32.mrb[130].mxu0  ;;  %v4438_v5 = vld [vmem:[%s5472_s6 + $0x30] sm:$0xff]   ;;  %v4439_v63 = vld [vmem:[%s5472_s6 + $0x38] sm:$0xff]  }
 0xc65   :  { %v3463_v13 = vsel %vm118_vm0, %v3402_v12, 0.0  ;;  %v4375_v32 = vpop.f32.mrb[131].mxu0 }
 0xc66   :  { %v3464_v35 = vadd.f32 %v3463_v13, %v3462_v7  ;;  %4395 = vmatpush3.bf16.msra.mxu1 %v4434_v11  ;;  %v4436_v7 = vld [vmem:[%s5472_s6 + $0x20] sm:$0xff]   ;;  %s4678_s6 = smov [#allocation11]  }
 0xc67   :  { %4396 = vmatprep.subr.bf16.mxu1 %v4676_v16 }
 0xc6a   :  { %v3446_v45 = vpop.f32.mrb[120].mxu1  ;;  %4397 = vmatpush3.bf16.msra.mxu1 %v4435_v1 }
 0xc6b   :  { %v3458_v38 = vsel %vm118_vm0, %v3446_v45, 0.0  ;;  %v4380_v40 = vpop.f32.mrb[121].mxu1  ;;  %4398 = vmatprep.subr.bf16.mxu1 %v4676_v16 }
 0xc6c   :  { %v3459_v41 = vadd.f32 %v3458_v38, %v3457_v4  ;;  %v3449_v42 = vpop.f32.mrb[122].mxu1  ;;  %v3838_v4 = vld [vmem:[%s5474_s8] ss:$0 sm:$0xff]  ;;  %s3752_s8 = sshll.u32 %s4678_s6, 4  ;;  %s3753_s8 = int_to_ptr.vmem [resolvable:$true] %s3752_s8 }
 0xc6d   :  { %v3465_v33 = vsel %vm118_vm0, %v3449_v42, 0.0  ;;  %v4381_v43 = vpop.f32.mrb[123].mxu1  ;;  %s4637_s2 = scalar_lea.vmem %s3753_s8, 256  ;;  %p4642_p13 = scmp.lt.s32.totalorder %s3753_s8, %s3753_s8 }
 0xc6e   :  { %v3471_v47 = vadd.f32 %v3470_v37, %v3459_v41  ;;  %v3466_v48 = vadd.f32 %v3465_v33, %v3464_v35  ;;  %4399 = vmatpush3.bf16.msra.mxu1 %v4436_v7  ;;  %p4638_p12 = scmp.ne.s32.totalorder %s3753_s8, %s4637_s2  ;;  %p4643_p0 = scmp.lt.s32.totalorder %s4637_s2, %s4637_s2 }
 0xc6f   :  { %4400 = vmatprep.subr.bf16.mxu1 %v4676_v16 }
 0xc70   :  { %v3472_v34 = vadd.f32 %v3470_v37, %v3466_v48  ;;  %v5394_v49 = vadd.f32 %v3471_v47, %v5118_v50  ;;  %p4644_p1 = por %p4643_p0, %p4642_p13 }
 0xc72   :  { %v3475_v51 = vsel %vm118_vm0, %v5394_v49, 0.0  ;;  %v5399_v54 = vadd.f32 %v3472_v34, %v5122_v53  ;;  %4401 = vmatpush3.bf16.msra.mxu1 %v4437_v9  ;;  %p4645_p2 = pnand %p4644_p1, %p4638_p12 }
 0xc73   :  { %3476 = vadd.xlane.f32.xlu0 %v3475_v51  ;;  %4402 = vmatprep.subr.bf16.mxu1 %v4676_v16 }
 0xc74   :  { %v3478_v56 = vsel %vm118_vm0, %v5399_v54, 0.0 }
 0xc75   :  { %3479 = vadd.xlane.f32.xlu1 %v3478_v56 }
 0xc76   :  { %4403 = vmatpush3.bf16.msra.mxu1 %v4438_v5  ;;  %v109_v5 = vld [vmem:[#allocation10 + $0x8] sm:$0xff] }
 0xc77   :  { %4404 = vmatprep.subr.bf16.mxu1 %v4676_v16 }
 0xc7a   :  { %4405 = vmatpush3.bf16.msra.mxu1 %v4439_v63  ;;  %v3653_v63 = vrot.slane %v109_v5, %v148_v27 }
 0xd00   :  { %v3477_v44 = vpop.xlane.xlu0 %3476 }
 0xd01   :  { %v3481_v46 = vmul.f32 0.03125, %v3477_v44 }
 0xd02   :  { %v3480_v58 = vpop.xlane.xlu1 %3479 }
 0xd03   :  { %v3483_v60 = vsub.f32 %v5394_v49, %v3481_v46  ;;  %v3482_v61 = vmul.f32 0.03125, %v3480_v58 }
 0xd05   :  { %v3484_v50 = vsub.f32 %v5399_v54, %v3482_v61  ;;  %v3485_v14 = vmul.f32 %v3483_v60, %v3483_v60 }
 0xd07   :  { %v3487_v2 = vsel %vm118_vm0, %v3485_v14, 0.0  ;;  %v3486_v15 = vmul.f32 %v3484_v50, %v3484_v50 }
 0xd08   :  { %3488 = vadd.xlane.f32.xlu0 %v3487_v2 }
 0xd09   :  { %v3490_v53 = vsel %vm118_vm0, %v3486_v15, 0.0 }
 0xd0a   :  { %3491 = vadd.xlane.f32.xlu1 %v3490_v53 }
 0xd95   :  { %v3489_v17 = vpop.xlane.xlu0 %3488 }
 0xd96   :  { %v3493_v39 = vmul.f32 0.03125, %v3489_v17 }
 0xd97   :  { %v3492_v19 = vpop.xlane.xlu1 %3491 }
 0xd98   :  { %v3495_v21 = vadd.f32 1e-05, %v3493_v39  ;;  %v3494_v22 = vmul.f32 0.03125, %v3492_v19 }
 0xd9a   :  { %4512 = vrsqrt.f32 %v3495_v21  ;;  %v3496_v24 = vadd.f32 1e-05, %v3494_v22 }
 0xd9c   :  { %4514 = vrsqrt.f32 %v3496_v24 }
 0xda4   :  { %v4513_v59 = vpop.eup %4512 }
 0xda5   :  { %v3499_v29 = vmul.f32 %v4513_v59, %v3483_v60 }
 0xda6   :  { %v4515_v30 = vpop.eup %4514 }
 0xda7   :  { %v3505_v55 = vmul.f32 %v3504_v52, %v3499_v29  ;;  %v3500_v23 = vmul.f32 %v4515_v30, %v3484_v50 }
 0xda9   :  { %v3506_v0 = vmul.f32 %v3504_v52, %v3500_v23  ;;  %v3511_v6 = vadd.f32 %v3510_v31, %v3505_v55 }
 0xdab   :  { %v3512_v8 = vadd.f32 %v3510_v31, %v3506_v0 }
 0xdad   :  { %v3513_v28 = vpack.c.bf16 %v3512_v8, %v3511_v6 }
 0xdaf   :  { %4387 = vmatmul.mubr.msk.bf16.vlgmr.msra.gmra.mrb[132].mxu0 %vm118_vm0, %v3513_v28 }
 0xe82   :  { %v3574_v12 = vpop.f32.mrb[132].mxu0 }
 0xe83   :  { %v3575_v13 = vadd.f32 %v3838_v4, %v3574_v12  ;;  %v4388_v32 = vpop.f32.mrb[133].mxu0 }
 0xe84   :  { %v3577_v35 = vpop.f32.mrb[134].mxu0 }
 0xe85   :  { %v3583_v36 = vmul.f32 0.70710677, %v3575_v13  ;;  %v3578_v45 = vadd.f32 %v3838_v4, %v3577_v35  ;;  %v4389_v20 = vpop.f32.mrb[135].mxu0  ;;  %v3581_v3 = vmul.f32 0.5, %v3575_v13 }
 0xe87   :  { %v3585_v37 = vand.u32 2147483647, %v3583_v36  ;;  %v3584_v38 = vmul.f32 0.70710677, %v3578_v45  ;;  %vm3623_vm5 = vcmp.ge.f32.partialorder %v3583_v36, 0.0  ;;  %v3582_v10 = vmul.f32 0.5, %v3578_v45 }
 0xe89   :  { %v3587_v40 = vmul.f32 0.3275911, %v3585_v37  ;;  %v3586_v16 = vand.u32 2147483647, %v3584_v38  ;;  %v3611_v43 = vsub.f32 0.0, %v3585_v37  ;;  %vm3624_vm6 = vcmp.ge.f32.partialorder %v3584_v38, 0.0 }
 0xe8b   :  { %v3589_v41 = vadd.f32 1.0, %v3587_v40  ;;  %v3588_v42 = vmul.f32 0.3275911, %v3586_v16  ;;  %v3612_v47 = vsub.f32 0.0, %v3586_v16  ;;  %v3613_v34 = vmul.f32 %v3611_v43, %v3585_v37 }
 0xe8d   :  { %4516 = vrcp.f32 %v3589_v41  ;;  %v3590_v33 = vadd.f32 1.0, %v3588_v42  ;;  %v3614_v46 = vmul.f32 %v3612_v47, %v3586_v16  ;;  %v3615_v58 = vmul.f32 1.442695, %v3613_v34 }
 0xe8f   :  { %4518 = vrcp.f32 %v3590_v33  ;;  %v3617_v2 = vmul.f32 1.442695, %v3614_v46 }
 0xe90   :  { %4520 = vpow2.f32 %v3615_v58 }
 0xe91   :  { %4522 = vpow2.f32 %v3617_v2 }
 0xe97   :  { %v4517_v48 = vpop.eup %4516 }
 0xe98   :  { %v3593_v51 = vmul.f32 1.0614054, %v4517_v48 }
 0xe99   :  { %v4519_v56 = vpop.eup %4518 }
 0xe9a   :  { %v3595_v44 = vadd.f32 -1.4531521, %v3593_v51  ;;  %v3594_v60 = vmul.f32 1.0614054, %v4519_v56  ;;  %v4521_v25 = vpop.eup %4520 }
 0xe9b   :  { %v4523_v29 = vpop.eup %4522 }
 0xe9c   :  { %v3597_v61 = vmul.f32 %v4517_v48, %v3595_v44  ;;  %v3596_v50 = vadd.f32 -1.4531521, %v3594_v60 }
 0xe9e   :  { %v3599_v14 = vadd.f32 1.4214138, %v3597_v61  ;;  %v3598_v15 = vmul.f32 %v4519_v56, %v3596_v50 }
 0xea0   :  { %v3601_v53 = vmul.f32 %v4517_v48, %v3599_v14  ;;  %v3600_v62 = vadd.f32 1.4214138, %v3598_v15 }
 0xea2   :  { %v3603_v18 = vadd.f32 -0.28449672, %v3601_v53  ;;  %v3602_v17 = vmul.f32 %v4519_v56, %v3600_v62 }
 0xea4   :  { %v3605_v39 = vmul.f32 %v4517_v48, %v3603_v18  ;;  %v3604_v19 = vadd.f32 -0.28449672, %v3602_v17 }
 0xea6   :  { %v3607_v21 = vadd.f32 0.2548296, %v3605_v39  ;;  %v3606_v22 = vmul.f32 %v4519_v56, %v3604_v19 }
 0xea8   :  { %v3609_v24 = vmul.f32 %v4517_v48, %v3607_v21  ;;  %v3608_v52 = vadd.f32 0.2548296, %v3606_v22 }
 0xeaa   :  { %v3619_v57 = vmul.f32 %v4521_v25, %v3609_v24  ;;  %v3610_v59 = vmul.f32 %v4519_v56, %v3608_v52 }
 0xeac   :  { %v3621_v30 = vsub.f32 1.0, %v3619_v57  ;;  %v3620_v55 = vmul.f32 %v4523_v29, %v3610_v59 }
 0xeae   :  { %v3625_v23 = vsub.f32 0.0, %v3621_v30  ;;  %v3622_v31 = vsub.f32 1.0, %v3620_v55 }
 0xeb0   :  { %v3627_v0 = vsel %vm3623_vm5, %v3621_v30, %v3625_v23  ;;  %v3626_v6 = vsub.f32 0.0, %v3622_v31 }
 0xeb1   :  { %v3629_v8 = vadd.f32 1.0, %v3627_v0 }
 0xeb2   :  { %v3628_v28 = vsel %vm3624_vm6, %v3622_v31, %v3626_v6 }
 0xeb3   :  { %v3630_v11 = vadd.f32 1.0, %v3628_v28  ;;  %v3631_v1 = vmul.f32 %v3629_v8, %v3581_v3 }
 0xeb5   :  { %v3632_v7 = vmul.f32 %v3630_v11, %v3582_v10 }
 0xeb7   :  { %v3633_v9 = vpack.c.bf16 %v3632_v7, %v3631_v1 }
 0xeb9   :  { %4407 = vmatmul.mubr.bf16.vlgmr.msra.gmra.mrb[124].mxu1 %v3633_v9 }
 0xf8c   :  { %v3736_v4 = vpop.f32.mrb[124].mxu1 }
 0xf8d   :  { %v3737_v12 = vadd.f32 %v3736_v4, %v3653_v63  ;;  %v4408_v32 = vpop.f32.mrb[125].mxu1 }
 0xf8e   :  { %v3739_v35 = vpop.f32.mrb[126].mxu1 }
 0xf8f   :  { %v3743_v36 = vadd.f32 %v3737_v12, %v5394_v49  ;;  %v3740_v20 = vadd.f32 %v3739_v35, %v3653_v63  ;;  %v4409_v13 = vpop.f32.mrb[127].mxu1 }
 0xf91   :  { %3745 = vst.msk [vmem:[#allocation11] sm:$0xff] %vm118_vm0, %v3743_v36  ;;  %v3744_v45 = vadd.f32 %v3740_v20, %v5399_v54 }
 0xf93   :  { %3746 = vst.msk [vmem:[#allocation11 + $0x8] sm:$0xff] %vm118_vm0, %v3744_v45 }
 0xf94   :  { %4648 = shalt.err (!%p4645_p2)
}
 0xf95   :  { %s4649_s30 = scalar_lea.hbm %s5475_s9, 256 }
 0xf96   :  { %p4650_p3 = scmp.ne.s32.totalorder %s5475_s9, %s4649_s30  ;;  %p4653_p4 = scmp.lt.u32.totalorder %s4649_s30, %s5475_s9 }
 0xf98   :  { %p4655_p5 = pnand %p4653_p4, %p4650_p3 }
 0xf9a   :  { %4658 = shalt.err (!%p4655_p5)
}
 0xf9b   :  { %3758 = dma.vmem_to_hbm [thread:$0]  %s3753_s8, 256, %s5475_s9, [#allocation4], %s4672_s5, %s4672_s5, %s4673_s24  }
 0xf9c   :  { %4665 = dma.done.wait [#allocation4], 256  }
 0xf9d   :  { %4666 = vsyncadd [#allocation4], 4294967040 }
 0xf9e   :  { %3762 = vsyncpa [#allocation3], 1 }
 0xf9f   :  { %3763 = vsyncpa [#allocation6], 1 }
 0xfa0   :  { %3764 = vsyncpa [#allocation9], 1 }
 0xfa1   :  { %3765 = vsyncpa [#allocation4], 1 }

</bundles_post_ra>
